<compile_context>
chip_gen: v7x
topology: tpu7x:2x2x1
jax: 0.10.0
libtpu: 0.0.40
codegen_flags: <defaults>
</compile_context>

<pallas_src>
import functools

import jax
import jax.numpy as jnp
from jax.experimental import pallas as pl
from jax.experimental.pallas import tpu as pltpu


_NEG_INF = -1e30


def _leaky_relu(x, slope=0.2):
    return jnp.where(x > 0, x, slope * x)


def _elu(x):
    return jnp.where(x > 0, x, jnp.exp(x) - 1.0)


# ------------------------------ fused kernel --------------------------------

def gat3_fused_kernel(x_ref, ab0_ref, ab1_ref, ab2_ref,
                      w0_ref, a0_ref, b0_ref,
                      w1_ref, a1_ref, b1_ref,
                      w2_ref, a2_ref, rw2_ref, b2_ref,
                      out_ref, hbuf_ref,
                      *, heads, hid, out_feats):
    """Fused 3-layer GATConv stack + final head-mean, fully VMEM resident."""

    def project(h, w_ref, a_ref, H):
        # Shared linear projection + all-head attention logits: two MXU matmuls.
        feat = jnp.dot(h, w_ref[...], preferred_element_type=jnp.float32)      # (N, H*F)
        logits = jnp.dot(feat, a_ref[...], preferred_element_type=jnp.float32)  # (N, 2H)
        return feat, logits[:, :H], logits[:, H:]        # el (src), er (dst)

    def head_aggregate(feat, el, er, adj_bias, hh, F):
        # e[i, j] = leaky_relu(el[src=j] + er[dst=i]) + additive edge mask
        e = _leaky_relu(er[:, hh:hh + 1] + el[:, hh:hh + 1].T) + adj_bias       # (N, N)
        m = jnp.max(e, axis=1, keepdims=True)
        p = jnp.exp(e - m)                          # off-edge entries underflow to 0
        denom = jnp.sum(p, axis=1, keepdims=True)
        inv = pl.reciprocal(jnp.maximum(denom, 1e-20), approx=True)             # EUP slot
        alpha = p * inv
        return jnp.dot(alpha, feat[:, hh * F:(hh + 1) * F],
                       preferred_element_type=jnp.float32)                      # (N, F)

    def row_ok(adj_bias):
        # 1.0 for dst nodes with >= 1 in-edge, 0.0 otherwise (DGL zero-in-degree
        # nodes receive no message; residual + bias still apply).
        return (jnp.max(adj_bias, axis=1, keepdims=True) > -1.0).astype(jnp.float32)

    H0, H1, H2 = heads
    F0 = F1 = hid
    F2 = out_feats

    # ---- layer 0: GATConv(in, hid, H0), no residual, ELU -------------------
    x = x_ref[...]
    ab0 = ab0_ref[...]
    feat0, el0, er0 = project(x, w0_ref, a0_ref, H0)
    for hh in range(H0):
        hbuf_ref[:, hh * F0:(hh + 1) * F0] = head_aggregate(feat0, el0, er0, ab0, hh, F0)
    h1 = _elu(hbuf_ref[:, 0:H0 * F0] * row_ok(ab0) + b0_ref[...])               # (N, H0*hid)

    # ---- layer 1: GATConv(H0*hid, hid, H1), identity residual, ELU ---------
    ab1 = ab1_ref[...]
    feat1, el1, er1 = project(h1, w1_ref, a1_ref, H1)
    for hh in range(H1):
        hbuf_ref[:, hh * F1:(hh + 1) * F1] = head_aggregate(feat1, el1, er1, ab1, hh, F1)
    h2 = _elu(hbuf_ref[:, 0:H1 * F1] * row_ok(ab1) + h1 + b1_ref[...])          # (N, H1*hid)

    # ---- layer 2: GATConv(H1*hid, out, H2), linear residual, no act, mean ---
    ab2 = ab2_ref[...]
    feat2, el2, er2 = project(h2, w2_ref, a2_ref, H2)
    acc = jnp.zeros((x.shape[0], F2), jnp.float32)
    for hh in range(H2):
        acc = acc + head_aggregate(feat2, el2, er2, ab2, hh, F2)
    resid = jnp.dot(h2, rw2_ref[...], preferred_element_type=jnp.float32) + b2_ref[...]
    extra = jnp.zeros((x.shape[0], F2), jnp.float32)
    for hh in range(H2):
        extra = extra + resid[:, hh * F2:(hh + 1) * F2]
    # mean over heads of (agg_h + residual_h + bias_h)
    out_ref[...] = (acc * row_ok(ab2) + extra) * (1.0 / H2)


# ------------------------------ host wrapper ---------------------------------

def pack_attn(attn_l, attn_r):
    """Block-diagonal (H*F, 2H) pack so feat @ A = [el_0..el_{H-1} | er_0..er_{H-1}]."""
    H, F = attn_l.shape
    eye = jnp.eye(H, dtype=jnp.float32)
    a_l = (attn_l[:, :, None] * eye[:, None, :]).reshape(H * F, H)
    a_r = (attn_r[:, :, None] * eye[:, None, :]).reshape(H * F, H)
    return jnp.concatenate([a_l, a_r], axis=1)


def gat_forward(blocks_adj, x, layer_params):
    """Fused forward of the 3-layer GAT (flatten between layers, head-mean at end)."""
    p0, p1, p2 = layer_params
    N = x.shape[0]
    H0, H1, H2 = p0["num_heads"], p1["num_heads"], p2["num_heads"]
    hid = p0["out_feats"]
    out_size = p2["out_feats"]
    assert p1["out_feats"] == hid
    # Layer-1 residual is DGL's Identity case when in_feats == H1*hid (true here).
    assert H0 * hid == H1 * hid, "layer-1 residual expected to be identity"
    assert "res_W" in p2, "layer-2 residual expected to be a linear projection"

    # Host-side prep: additive edge-mask biases and block-diagonal attention packs.
    adj_bias = [jnp.where(a > 0.0, 0.0, _NEG_INF).astype(jnp.float32)
                for a in blocks_adj]
    a_pack = [pack_attn(p["attn_l"], p["attn_r"]) for p in (p0, p1, p2)]

    kernel = functools.partial(gat3_fused_kernel, heads=(H0, H1, H2),
                               hid=hid, out_feats=out_size)
    vmem = pl.BlockSpec(memory_space=pltpu.MemorySpace.VMEM)
    maxw = max(H0 * hid, H1 * hid)
    return pl.pallas_call(
        kernel,
        out_shape=jax.ShapeDtypeStruct((N, out_size), jnp.float32),
        in_specs=[vmem] * 14,
        out_specs=vmem,
        scratch_shapes=[pltpu.VMEM((N, maxw), jnp.float32)],
    )(x, adj_bias[0], adj_bias[1], adj_bias[2],
      p0["W"], a_pack[0], p0["bias"],
      p1["W"], a_pack[1], p1["bias"],
      p2["W"], a_pack[2], p2["res_W"], p2["bias"])


# ---------------- parameter construction (deterministic, synthetic) ----------

def make_layer_params(key, in_feats, out_feats, num_heads, residual):
    k = jax.random.split(key, 5)
    p = dict(
        W=(jax.random.normal(k[0], (in_feats, num_heads * out_feats), jnp.float32)
           * (1.0 / jnp.sqrt(in_feats))),
        attn_l=jax.random.normal(k[1], (num_heads, out_feats), jnp.float32) * 0.1,
        attn_r=jax.random.normal(k[2], (num_heads, out_feats), jnp.float32) * 0.1,
        bias=jax.random.normal(k[3], (1, num_heads * out_feats), jnp.float32) * 0.1,
        num_heads=num_heads, out_feats=out_feats, residual=residual,
    )
    if residual and in_feats != num_heads * out_feats:
        p["res_W"] = (jax.random.normal(k[4], (in_feats, num_heads * out_feats),
                                        jnp.float32) * (1.0 / jnp.sqrt(in_feats)))
    return p


# ---------------- plain-JAX reference (same GATConv semantics) ---------------

def ref_layer(h, adj, p, apply_elu):
    H, F = p["num_heads"], p["out_feats"]
    N = h.shape[0]
    feat = (h @ p["W"]).reshape(N, H, F)
    el = jnp.einsum("nhf,hf->nh", feat, p["attn_l"])   # src
    er = jnp.einsum("nhf,hf->nh", feat, p["attn_r"])   # dst
    e = _leaky_relu(er[:, None, :] + el[None, :, :])   # (N_dst, N_src, H)
    mask = (adj > 0.0)[:, :, None]
    e = jnp.where(mask, e, _NEG_INF)
    m = jnp.max(e, axis=1, keepdims=True)
    pexp = jnp.where(mask, jnp.exp(e - m), 0.0)
    denom = jnp.sum(pexp, axis=1, keepdims=True)
    alpha = jnp.where(denom > 0.0, pexp / jnp.where(denom > 0.0, denom, 1.0), 0.0)
    rst = jnp.einsum("ijh,jhf->ihf", alpha, feat)
    if p["residual"]:
        resval = (h @ p["res_W"]) if "res_W" in p else h
        rst = rst + resval.reshape(N, H, F)
    rst = rst + p["bias"].reshape(1, H, F)
    if apply_elu:
        rst = _elu(rst)
    return rst


def ref_forward(blocks_adj, x, layer_params):
    h = x
    L = len(layer_params)
    for l, (adj, p) in enumerate(zip(blocks_adj, layer_params)):
        out = ref_layer(h, adj, p, apply_elu=(l != L - 1))
        h = out.mean(axis=1) if l == L - 1 else out.reshape(out.shape[0], -1)
    return h


if __name__ == "__main__":
    key = jax.random.PRNGKey(0)
    N = 8                       # nodes per block (src set == dst set, synthetic)
    in_size, hid_size, out_size = 16, 8, 4
    heads = (4, 4, 6)

    k_x, k_a, k_p = jax.random.split(key, 3)
    x = jax.random.normal(k_x, (N, in_size), jnp.float32)

    # Three message-passing blocks: dense random adjacency + self-loops.
    adj_keys = jax.random.split(k_a, 3)
    blocks_adj = [
        ((jax.random.uniform(ak, (N, N)) < 0.5) | jnp.eye(N, dtype=bool)
         ).astype(jnp.float32)
        for ak in adj_keys
    ]

    pk = jax.random.split(k_p, 3)
    layer_params = [
        make_layer_params(pk[0], in_size, hid_size, heads[0], residual=False),
        make_layer_params(pk[1], hid_size * heads[0], hid_size, heads[1], residual=True),
        make_layer_params(pk[2], hid_size * heads[1], out_size, heads[2], residual=True),
    ]

    out = jax.block_until_ready(gat_forward(blocks_adj, x, layer_params))

    ref = ref_forward(blocks_adj, x, layer_params)
    assert out.shape == (N, out_size)
    # Slightly loose tolerance: the kernel's softmax uses the EUP approximate
    # reciprocal (pl.reciprocal(..., approx=True)); everything else is f32.
    assert jnp.allclose(out, ref, atol=2e-2, rtol=2e-2), "mismatch vs JAX reference"

    print("KERNEL_OK")
</pallas_src>

<mosaic_0001>
module attributes {stable_mosaic.version = 11 : i64} {
  func.func @gat3_fused_kernel(%arg0: memref<8x16xf32, #tpu.memory_space<vmem>>, %arg1: memref<8x8xf32, #tpu.memory_space<vmem>>, %arg2: memref<8x8xf32, #tpu.memory_space<vmem>>, %arg3: memref<8x8xf32, #tpu.memory_space<vmem>>, %arg4: memref<16x32xf32, #tpu.memory_space<vmem>>, %arg5: memref<32x8xf32, #tpu.memory_space<vmem>>, %arg6: memref<1x32xf32, #tpu.memory_space<vmem>>, %arg7: memref<32x32xf32, #tpu.memory_space<vmem>>, %arg8: memref<32x8xf32, #tpu.memory_space<vmem>>, %arg9: memref<1x32xf32, #tpu.memory_space<vmem>>, %arg10: memref<32x24xf32, #tpu.memory_space<vmem>>, %arg11: memref<24x12xf32, #tpu.memory_space<vmem>>, %arg12: memref<32x24xf32, #tpu.memory_space<vmem>>, %arg13: memref<1x24xf32, #tpu.memory_space<vmem>>, %arg14: memref<8x4xf32, #tpu.memory_space<vmem>>, %arg15: memref<8x32xf32, #tpu.memory_space<vmem>>) attributes {dimension_semantics = [], scalar_prefetch = 0 : i64, scratch_operands = 1 : i64, tpu.core_type = #tpu.core_type<tc>} {
    %c0 = arith.constant 0 : index
    %c0_0 = arith.constant 0 : index
    %0 = vector.load %arg0[%c0, %c0_0] : memref<8x16xf32, #tpu.memory_space<vmem>>, vector<8x16xf32>
    %c0_1 = arith.constant 0 : index
    %c0_2 = arith.constant 0 : index
    %1 = vector.load %arg1[%c0_1, %c0_2] : memref<8x8xf32, #tpu.memory_space<vmem>>, vector<8x8xf32>
    %c0_3 = arith.constant 0 : index
    %c0_4 = arith.constant 0 : index
    %2 = vector.load %arg4[%c0_3, %c0_4] : memref<16x32xf32, #tpu.memory_space<vmem>>, vector<16x32xf32>
    %cst = arith.constant dense<0.000000e+00> : vector<8x32xf32>
    %3 = tpu.matmul %0, %2, %cst {dimension_numbers = #tpu.dot_dimension_numbers<[1], [0], [0], [1], [0, 0, 1, 1], [], []>} : vector<8x16xf32>, vector<16x32xf32>, vector<8x32xf32> -> vector<8x32xf32>
    %c0_5 = arith.constant 0 : index
    %c0_6 = arith.constant 0 : index
    %4 = vector.load %arg5[%c0_5, %c0_6] : memref<32x8xf32, #tpu.memory_space<vmem>>, vector<32x8xf32>
    %cst_7 = arith.constant dense<0.000000e+00> : vector<8x8xf32>
    %5 = tpu.matmul %3, %4, %cst_7 {dimension_numbers = #tpu.dot_dimension_numbers<[1], [0], [0], [1], [0, 0, 1, 1], [], []>} : vector<8x32xf32>, vector<32x8xf32>, vector<8x8xf32> -> vector<8x8xf32>
    %6 = vector.extract_strided_slice %5 {offsets = [0, 0], sizes = [8, 4], strides = [1, 1]} : vector<8x8xf32> to vector<8x4xf32>
    %7 = vector.extract_strided_slice %5 {offsets = [0, 4], sizes = [8, 4], strides = [1, 1]} : vector<8x8xf32> to vector<8x4xf32>
    %8 = vector.extract_strided_slice %7 {offsets = [0, 0], sizes = [8, 1], strides = [1, 1]} : vector<8x4xf32> to vector<8x1xf32>
    %9 = vector.extract_strided_slice %6 {offsets = [0, 0], sizes = [8, 1], strides = [1, 1]} : vector<8x4xf32> to vector<8x1xf32>
    %10 = tpu.transpose %9, [1, 0] : vector<8x1xf32> -> vector<1x8xf32>
    %11 = vector.broadcast %8 : vector<8x1xf32> to vector<8x8xf32>
    %12 = vector.broadcast %10 : vector<1x8xf32> to vector<8x8xf32>
    %13 = arith.addf %11, %12 : vector<8x8xf32>
    %cst_8 = arith.constant 0.000000e+00 : f32
    %14 = vector.broadcast %cst_8 : f32 to vector<8x8xf32>
    %15 = arith.cmpf ogt, %13, %14 : vector<8x8xf32>
    %cst_9 = arith.constant 2.000000e-01 : f32
    %16 = vector.broadcast %cst_9 : f32 to vector<8x8xf32>
    %17 = arith.mulf %16, %13 : vector<8x8xf32>
    %18 = arith.select %15, %13, %17 : vector<8x8xi1>, vector<8x8xf32>
    %19 = arith.addf %18, %1 : vector<8x8xf32>
    %cst_10 = arith.constant dense<0xFF800000> : vector<8xf32>
    %20 = vector.multi_reduction <maximumf>, %19, %cst_10 [1] : vector<8x8xf32> to vector<8xf32>
    %21 = vector.shape_cast %20 : vector<8xf32> to vector<8x1xf32>
    %22 = vector.broadcast %21 : vector<8x1xf32> to vector<8x8xf32>
    %23 = arith.subf %19, %22 : vector<8x8xf32>
    %24 = math.exp %23 : vector<8x8xf32>
    %cst_11 = arith.constant dense<0.000000e+00> : vector<8xf32>
    %25 = vector.multi_reduction <add>, %24, %cst_11 [1] : vector<8x8xf32> to vector<8xf32>
    %26 = vector.shape_cast %25 : vector<8xf32> to vector<8x1xf32>
    %cst_12 = arith.constant 9.99999968E-21 : f32
    %27 = vector.broadcast %cst_12 : f32 to vector<8x1xf32>
    %28 = arith.maximumf %26, %27 : vector<8x1xf32>
    %29 = tpu.reciprocal %28 {approx = true} : vector<8x1xf32> -> vector<8x1xf32>
    %30 = vector.broadcast %29 : vector<8x1xf32> to vector<8x8xf32>
    %31 = arith.mulf %24, %30 : vector<8x8xf32>
    %32 = vector.extract_strided_slice %3 {offsets = [0, 0], sizes = [8, 8], strides = [1, 1]} : vector<8x32xf32> to vector<8x8xf32>
    %cst_13 = arith.constant dense<0.000000e+00> : vector<8x8xf32>
    %33 = tpu.matmul %31, %32, %cst_13 {dimension_numbers = #tpu.dot_dimension_numbers<[1], [0], [0], [1], [0, 0, 1, 1], [], []>} : vector<8x8xf32>, vector<8x8xf32>, vector<8x8xf32> -> vector<8x8xf32>
    %c0_14 = arith.constant 0 : index
    %c0_15 = arith.constant 0 : index
    %34 = vector.load %arg15[%c0_14, %c0_15] : memref<8x32xf32, #tpu.memory_space<vmem>>, vector<8x8xf32>
    tpu.vector_store %arg15[%c0_14, %c0_15], %33 {strides = array<i32>} : memref<8x32xf32, #tpu.memory_space<vmem>>, vector<8x8xf32>,
    %35 = vector.extract_strided_slice %7 {offsets = [0, 1], sizes = [8, 1], strides = [1, 1]} : vector<8x4xf32> to vector<8x1xf32>
    %36 = vector.extract_strided_slice %6 {offsets = [0, 1], sizes = [8, 1], strides = [1, 1]} : vector<8x4xf32> to vector<8x1xf32>
    %37 = tpu.transpose %36, [1, 0] : vector<8x1xf32> -> vector<1x8xf32>
    %38 = vector.broadcast %35 : vector<8x1xf32> to vector<8x8xf32>
    %39 = vector.broadcast %37 : vector<1x8xf32> to vector<8x8xf32>
    %40 = arith.addf %38, %39 : vector<8x8xf32>
    %cst_16 = arith.constant 0.000000e+00 : f32
    %41 = vector.broadcast %cst_16 : f32 to vector<8x8xf32>
    %42 = arith.cmpf ogt, %40, %41 : vector<8x8xf32>
    %cst_17 = arith.constant 2.000000e-01 : f32
    %43 = vector.broadcast %cst_17 : f32 to vector<8x8xf32>
    %44 = arith.mulf %43, %40 : vector<8x8xf32>
    %45 = arith.select %42, %40, %44 : vector<8x8xi1>, vector<8x8xf32>
    %46 = arith.addf %45, %1 : vector<8x8xf32>
    %cst_18 = arith.constant dense<0xFF800000> : vector<8xf32>
    %47 = vector.multi_reduction <maximumf>, %46, %cst_18 [1] : vector<8x8xf32> to vector<8xf32>
    %48 = vector.shape_cast %47 : vector<8xf32> to vector<8x1xf32>
    %49 = vector.broadcast %48 : vector<8x1xf32> to vector<8x8xf32>
    %50 = arith.subf %46, %49 : vector<8x8xf32>
    %51 = math.exp %50 : vector<8x8xf32>
    %cst_19 = arith.constant dense<0.000000e+00> : vector<8xf32>
    %52 = vector.multi_reduction <add>, %51, %cst_19 [1] : vector<8x8xf32> to vector<8xf32>
    %53 = vector.shape_cast %52 : vector<8xf32> to vector<8x1xf32>
    %cst_20 = arith.constant 9.99999968E-21 : f32
    %54 = vector.broadcast %cst_20 : f32 to vector<8x1xf32>
    %55 = arith.maximumf %53, %54 : vector<8x1xf32>
    %56 = tpu.reciprocal %55 {approx = true} : vector<8x1xf32> -> vector<8x1xf32>
    %57 = vector.broadcast %56 : vector<8x1xf32> to vector<8x8xf32>
    %58 = arith.mulf %51, %57 : vector<8x8xf32>
    %59 = vector.extract_strided_slice %3 {offsets = [0, 8], sizes = [8, 8], strides = [1, 1]} : vector<8x32xf32> to vector<8x8xf32>
    %cst_21 = arith.constant dense<0.000000e+00> : vector<8x8xf32>
    %60 = tpu.matmul %58, %59, %cst_21 {dimension_numbers = #tpu.dot_dimension_numbers<[1], [0], [0], [1], [0, 0, 1, 1], [], []>} : vector<8x8xf32>, vector<8x8xf32>, vector<8x8xf32> -> vector<8x8xf32>
    %c0_22 = arith.constant 0 : index
    %c8 = arith.constant 8 : index
    %61 = vector.load %arg15[%c0_22, %c8] : memref<8x32xf32, #tpu.memory_space<vmem>>, vector<8x8xf32>
    tpu.vector_store %arg15[%c0_22, %c8], %60 {strides = array<i32>} : memref<8x32xf32, #tpu.memory_space<vmem>>, vector<8x8xf32>,
    %62 = vector.extract_strided_slice %7 {offsets = [0, 2], sizes = [8, 1], strides = [1, 1]} : vector<8x4xf32> to vector<8x1xf32>
    %63 = vector.extract_strided_slice %6 {offsets = [0, 2], sizes = [8, 1], strides = [1, 1]} : vector<8x4xf32> to vector<8x1xf32>
    %64 = tpu.transpose %63, [1, 0] : vector<8x1xf32> -> vector<1x8xf32>
    %65 = vector.broadcast %62 : vector<8x1xf32> to vector<8x8xf32>
    %66 = vector.broadcast %64 : vector<1x8xf32> to vector<8x8xf32>
    %67 = arith.addf %65, %66 : vector<8x8xf32>
    %cst_23 = arith.constant 0.000000e+00 : f32
    %68 = vector.broadcast %cst_23 : f32 to vector<8x8xf32>
    %69 = arith.cmpf ogt, %67, %68 : vector<8x8xf32>
    %cst_24 = arith.constant 2.000000e-01 : f32
    %70 = vector.broadcast %cst_24 : f32 to vector<8x8xf32>
    %71 = arith.mulf %70, %67 : vector<8x8xf32>
    %72 = arith.select %69, %67, %71 : vector<8x8xi1>, vector<8x8xf32>
    %73 = arith.addf %72, %1 : vector<8x8xf32>
    %cst_25 = arith.constant dense<0xFF800000> : vector<8xf32>
    %74 = vector.multi_reduction <maximumf>, %73, %cst_25 [1] : vector<8x8xf32> to vector<8xf32>
    %75 = vector.shape_cast %74 : vector<8xf32> to vector<8x1xf32>
    %76 = vector.broadcast %75 : vector<8x1xf32> to vector<8x8xf32>
    %77 = arith.subf %73, %76 : vector<8x8xf32>
    %78 = math.exp %77 : vector<8x8xf32>
    %cst_26 = arith.constant dense<0.000000e+00> : vector<8xf32>
    %79 = vector.multi_reduction <add>, %78, %cst_26 [1] : vector<8x8xf32> to vector<8xf32>
    %80 = vector.shape_cast %79 : vector<8xf32> to vector<8x1xf32>
    %cst_27 = arith.constant 9.99999968E-21 : f32
    %81 = vector.broadcast %cst_27 : f32 to vector<8x1xf32>
    %82 = arith.maximumf %80, %81 : vector<8x1xf32>
    %83 = tpu.reciprocal %82 {approx = true} : vector<8x1xf32> -> vector<8x1xf32>
    %84 = vector.broadcast %83 : vector<8x1xf32> to vector<8x8xf32>
    %85 = arith.mulf %78, %84 : vector<8x8xf32>
    %86 = vector.extract_strided_slice %3 {offsets = [0, 16], sizes = [8, 8], strides = [1, 1]} : vector<8x32xf32> to vector<8x8xf32>
    %cst_28 = arith.constant dense<0.000000e+00> : vector<8x8xf32>
    %87 = tpu.matmul %85, %86, %cst_28 {dimension_numbers = #tpu.dot_dimension_numbers<[1], [0], [0], [1], [0, 0, 1, 1], [], []>} : vector<8x8xf32>, vector<8x8xf32>, vector<8x8xf32> -> vector<8x8xf32>
    %c0_29 = arith.constant 0 : index
    %c16 = arith.constant 16 : index
    %88 = vector.load %arg15[%c0_29, %c16] : memref<8x32xf32, #tpu.memory_space<vmem>>, vector<8x8xf32>
    tpu.vector_store %arg15[%c0_29, %c16], %87 {strides = array<i32>} : memref<8x32xf32, #tpu.memory_space<vmem>>, vector<8x8xf32>,
    %89 = vector.extract_strided_slice %7 {offsets = [0, 3], sizes = [8, 1], strides = [1, 1]} : vector<8x4xf32> to vector<8x1xf32>
    %90 = vector.extract_strided_slice %6 {offsets = [0, 3], sizes = [8, 1], strides = [1, 1]} : vector<8x4xf32> to vector<8x1xf32>
    %91 = tpu.transpose %90, [1, 0] : vector<8x1xf32> -> vector<1x8xf32>
    %92 = vector.broadcast %89 : vector<8x1xf32> to vector<8x8xf32>
    %93 = vector.broadcast %91 : vector<1x8xf32> to vector<8x8xf32>
    %94 = arith.addf %92, %93 : vector<8x8xf32>
    %cst_30 = arith.constant 0.000000e+00 : f32
    %95 = vector.broadcast %cst_30 : f32 to vector<8x8xf32>
    %96 = arith.cmpf ogt, %94, %95 : vector<8x8xf32>
    %cst_31 = arith.constant 2.000000e-01 : f32
    %97 = vector.broadcast %cst_31 : f32 to vector<8x8xf32>
    %98 = arith.mulf %97, %94 : vector<8x8xf32>
    %99 = arith.select %96, %94, %98 : vector<8x8xi1>, vector<8x8xf32>
    %100 = arith.addf %99, %1 : vector<8x8xf32>
    %cst_32 = arith.constant dense<0xFF800000> : vector<8xf32>
    %101 = vector.multi_reduction <maximumf>, %100, %cst_32 [1] : vector<8x8xf32> to vector<8xf32>
    %102 = vector.shape_cast %101 : vector<8xf32> to vector<8x1xf32>
    %103 = vector.broadcast %102 : vector<8x1xf32> to vector<8x8xf32>
    %104 = arith.subf %100, %103 : vector<8x8xf32>
    %105 = math.exp %104 : vector<8x8xf32>
    %cst_33 = arith.constant dense<0.000000e+00> : vector<8xf32>
    %106 = vector.multi_reduction <add>, %105, %cst_33 [1] : vector<8x8xf32> to vector<8xf32>
    %107 = vector.shape_cast %106 : vector<8xf32> to vector<8x1xf32>
    %cst_34 = arith.constant 9.99999968E-21 : f32
    %108 = vector.broadcast %cst_34 : f32 to vector<8x1xf32>
    %109 = arith.maximumf %107, %108 : vector<8x1xf32>
    %110 = tpu.reciprocal %109 {approx = true} : vector<8x1xf32> -> vector<8x1xf32>
    %111 = vector.broadcast %110 : vector<8x1xf32> to vector<8x8xf32>
    %112 = arith.mulf %105, %111 : vector<8x8xf32>
    %113 = vector.extract_strided_slice %3 {offsets = [0, 24], sizes = [8, 8], strides = [1, 1]} : vector<8x32xf32> to vector<8x8xf32>
    %cst_35 = arith.constant dense<0.000000e+00> : vector<8x8xf32>
    %114 = tpu.matmul %112, %113, %cst_35 {dimension_numbers = #tpu.dot_dimension_numbers<[1], [0], [0], [1], [0, 0, 1, 1], [], []>} : vector<8x8xf32>, vector<8x8xf32>, vector<8x8xf32> -> vector<8x8xf32>
    %c0_36 = arith.constant 0 : index
    %c24 = arith.constant 24 : index
    %115 = vector.load %arg15[%c0_36, %c24] : memref<8x32xf32, #tpu.memory_space<vmem>>, vector<8x8xf32>
    tpu.vector_store %arg15[%c0_36, %c24], %114 {strides = array<i32>} : memref<8x32xf32, #tpu.memory_space<vmem>>, vector<8x8xf32>,
    %c0_37 = arith.constant 0 : index
    %c0_38 = arith.constant 0 : index
    %116 = vector.load %arg15[%c0_37, %c0_38] : memref<8x32xf32, #tpu.memory_space<vmem>>, vector<8x32xf32>
    %cst_39 = arith.constant dense<0xFF800000> : vector<8xf32>
    %117 = vector.multi_reduction <maximumf>, %1, %cst_39 [1] : vector<8x8xf32> to vector<8xf32>
    %118 = vector.shape_cast %117 : vector<8xf32> to vector<8x1xf32>
    %cst_40 = arith.constant -1.000000e+00 : f32
    %119 = vector.broadcast %cst_40 : f32 to vector<8x1xf32>
    %120 = arith.cmpf ogt, %118, %119 : vector<8x1xf32>
    %121 = arith.extui %120 : vector<8x1xi1> to vector<8x1xi32>
    %122 = arith.sitofp %121 : vector<8x1xi32> to vector<8x1xf32>
    %123 = vector.broadcast %122 : vector<8x1xf32> to vector<8x32xf32>
    %124 = arith.mulf %116, %123 : vector<8x32xf32>
    %c0_41 = arith.constant 0 : index
    %c0_42 = arith.constant 0 : index
    %125 = vector.load %arg6[%c0_41, %c0_42] : memref<1x32xf32, #tpu.memory_space<vmem>>, vector<1x32xf32>
    %126 = vector.broadcast %125 : vector<1x32xf32> to vector<8x32xf32>
    %127 = arith.addf %124, %126 : vector<8x32xf32>
    %cst_43 = arith.constant 0.000000e+00 : f32
    %128 = vector.broadcast %cst_43 : f32 to vector<8x32xf32>
    %129 = arith.cmpf ogt, %127, %128 : vector<8x32xf32>
    %130 = math.exp %127 : vector<8x32xf32>
    %cst_44 = arith.constant 1.000000e+00 : f32
    %131 = vector.broadcast %cst_44 : f32 to vector<8x32xf32>
    %132 = arith.subf %130, %131 : vector<8x32xf32>
    %133 = arith.select %129, %127, %132 : vector<8x32xi1>, vector<8x32xf32>
    %c0_45 = arith.constant 0 : index
    %c0_46 = arith.constant 0 : index
    %134 = vector.load %arg2[%c0_45, %c0_46] : memref<8x8xf32, #tpu.memory_space<vmem>>, vector<8x8xf32>
    %c0_47 = arith.constant 0 : index
    %c0_48 = arith.constant 0 : index
    %135 = vector.load %arg7[%c0_47, %c0_48] : memref<32x32xf32, #tpu.memory_space<vmem>>, vector<32x32xf32>
    %cst_49 = arith.constant dense<0.000000e+00> : vector<8x32xf32>
    %136 = tpu.matmul %133, %135, %cst_49 {dimension_numbers = #tpu.dot_dimension_numbers<[1], [0], [0], [1], [0, 0, 1, 1], [], []>} : vector<8x32xf32>, vector<32x32xf32>, vector<8x32xf32> -> vector<8x32xf32>
    %c0_50 = arith.constant 0 : index
    %c0_51 = arith.constant 0 : index
    %137 = vector.load %arg8[%c0_50, %c0_51] : memref<32x8xf32, #tpu.memory_space<vmem>>, vector<32x8xf32>
    %cst_52 = arith.constant dense<0.000000e+00> : vector<8x8xf32>
    %138 = tpu.matmul %136, %137, %cst_52 {dimension_numbers = #tpu.dot_dimension_numbers<[1], [0], [0], [1], [0, 0, 1, 1], [], []>} : vector<8x32xf32>, vector<32x8xf32>, vector<8x8xf32> -> vector<8x8xf32>
    %139 = vector.extract_strided_slice %138 {offsets = [0, 0], sizes = [8, 4], strides = [1, 1]} : vector<8x8xf32> to vector<8x4xf32>
    %140 = vector.extract_strided_slice %138 {offsets = [0, 4], sizes = [8, 4], strides = [1, 1]} : vector<8x8xf32> to vector<8x4xf32>
    %141 = vector.extract_strided_slice %140 {offsets = [0, 0], sizes = [8, 1], strides = [1, 1]} : vector<8x4xf32> to vector<8x1xf32>
    %142 = vector.extract_strided_slice %139 {offsets = [0, 0], sizes = [8, 1], strides = [1, 1]} : vector<8x4xf32> to vector<8x1xf32>
    %143 = tpu.transpose %142, [1, 0] : vector<8x1xf32> -> vector<1x8xf32>
    %144 = vector.broadcast %141 : vector<8x1xf32> to vector<8x8xf32>
    %145 = vector.broadcast %143 : vector<1x8xf32> to vector<8x8xf32>
    %146 = arith.addf %144, %145 : vector<8x8xf32>
    %cst_53 = arith.constant 0.000000e+00 : f32
    %147 = vector.broadcast %cst_53 : f32 to vector<8x8xf32>
    %148 = arith.cmpf ogt, %146, %147 : vector<8x8xf32>
    %cst_54 = arith.constant 2.000000e-01 : f32
    %149 = vector.broadcast %cst_54 : f32 to vector<8x8xf32>
    %150 = arith.mulf %149, %146 : vector<8x8xf32>
    %151 = arith.select %148, %146, %150 : vector<8x8xi1>, vector<8x8xf32>
    %152 = arith.addf %151, %134 : vector<8x8xf32>
    %cst_55 = arith.constant dense<0xFF800000> : vector<8xf32>
    %153 = vector.multi_reduction <maximumf>, %152, %cst_55 [1] : vector<8x8xf32> to vector<8xf32>
    %154 = vector.shape_cast %153 : vector<8xf32> to vector<8x1xf32>
    %155 = vector.broadcast %154 : vector<8x1xf32> to vector<8x8xf32>
    %156 = arith.subf %152, %155 : vector<8x8xf32>
    %157 = math.exp %156 : vector<8x8xf32>
    %cst_56 = arith.constant dense<0.000000e+00> : vector<8xf32>
    %158 = vector.multi_reduction <add>, %157, %cst_56 [1] : vector<8x8xf32> to vector<8xf32>
    %159 = vector.shape_cast %158 : vector<8xf32> to vector<8x1xf32>
    %cst_57 = arith.constant 9.99999968E-21 : f32
    %160 = vector.broadcast %cst_57 : f32 to vector<8x1xf32>
    %161 = arith.maximumf %159, %160 : vector<8x1xf32>
    %162 = tpu.reciprocal %161 {approx = true} : vector<8x1xf32> -> vector<8x1xf32>
    %163 = vector.broadcast %162 : vector<8x1xf32> to vector<8x8xf32>
    %164 = arith.mulf %157, %163 : vector<8x8xf32>
    %165 = vector.extract_strided_slice %136 {offsets = [0, 0], sizes = [8, 8], strides = [1, 1]} : vector<8x32xf32> to vector<8x8xf32>
    %cst_58 = arith.constant dense<0.000000e+00> : vector<8x8xf32>
    %166 = tpu.matmul %164, %165, %cst_58 {dimension_numbers = #tpu.dot_dimension_numbers<[1], [0], [0], [1], [0, 0, 1, 1], [], []>} : vector<8x8xf32>, vector<8x8xf32>, vector<8x8xf32> -> vector<8x8xf32>
    %c0_59 = arith.constant 0 : index
    %c0_60 = arith.constant 0 : index
    %167 = vector.load %arg15[%c0_59, %c0_60] : memref<8x32xf32, #tpu.memory_space<vmem>>, vector<8x8xf32>
    tpu.vector_store %arg15[%c0_59, %c0_60], %166 {strides = array<i32>} : memref<8x32xf32, #tpu.memory_space<vmem>>, vector<8x8xf32>,
    %168 = vector.extract_strided_slice %140 {offsets = [0, 1], sizes = [8, 1], strides = [1, 1]} : vector<8x4xf32> to vector<8x1xf32>
    %169 = vector.extract_strided_slice %139 {offsets = [0, 1], sizes = [8, 1], strides = [1, 1]} : vector<8x4xf32> to vector<8x1xf32>
    %170 = tpu.transpose %169, [1, 0] : vector<8x1xf32> -> vector<1x8xf32>
    %171 = vector.broadcast %168 : vector<8x1xf32> to vector<8x8xf32>
    %172 = vector.broadcast %170 : vector<1x8xf32> to vector<8x8xf32>
    %173 = arith.addf %171, %172 : vector<8x8xf32>
    %cst_61 = arith.constant 0.000000e+00 : f32
    %174 = vector.broadcast %cst_61 : f32 to vector<8x8xf32>
    %175 = arith.cmpf ogt, %173, %174 : vector<8x8xf32>
    %cst_62 = arith.constant 2.000000e-01 : f32
    %176 = vector.broadcast %cst_62 : f32 to vector<8x8xf32>
    %177 = arith.mulf %176, %173 : vector<8x8xf32>
    %178 = arith.select %175, %173, %177 : vector<8x8xi1>, vector<8x8xf32>
    %179 = arith.addf %178, %134 : vector<8x8xf32>
    %cst_63 = arith.constant dense<0xFF800000> : vector<8xf32>
    %180 = vector.multi_reduction <maximumf>, %179, %cst_63 [1] : vector<8x8xf32> to vector<8xf32>
    %181 = vector.shape_cast %180 : vector<8xf32> to vector<8x1xf32>
    %182 = vector.broadcast %181 : vector<8x1xf32> to vector<8x8xf32>
    %183 = arith.subf %179, %182 : vector<8x8xf32>
    %184 = math.exp %183 : vector<8x8xf32>
    %cst_64 = arith.constant dense<0.000000e+00> : vector<8xf32>
    %185 = vector.multi_reduction <add>, %184, %cst_64 [1] : vector<8x8xf32> to vector<8xf32>
    %186 = vector.shape_cast %185 : vector<8xf32> to vector<8x1xf32>
    %cst_65 = arith.constant 9.99999968E-21 : f32
    %187 = vector.broadcast %cst_65 : f32 to vector<8x1xf32>
    %188 = arith.maximumf %186, %187 : vector<8x1xf32>
    %189 = tpu.reciprocal %188 {approx = true} : vector<8x1xf32> -> vector<8x1xf32>
    %190 = vector.broadcast %189 : vector<8x1xf32> to vector<8x8xf32>
    %191 = arith.mulf %184, %190 : vector<8x8xf32>
    %192 = vector.extract_strided_slice %136 {offsets = [0, 8], sizes = [8, 8], strides = [1, 1]} : vector<8x32xf32> to vector<8x8xf32>
    %cst_66 = arith.constant dense<0.000000e+00> : vector<8x8xf32>
    %193 = tpu.matmul %191, %192, %cst_66 {dimension_numbers = #tpu.dot_dimension_numbers<[1], [0], [0], [1], [0, 0, 1, 1], [], []>} : vector<8x8xf32>, vector<8x8xf32>, vector<8x8xf32> -> vector<8x8xf32>
    %c0_67 = arith.constant 0 : index
    %c8_68 = arith.constant 8 : index
    %194 = vector.load %arg15[%c0_67, %c8_68] : memref<8x32xf32, #tpu.memory_space<vmem>>, vector<8x8xf32>
    tpu.vector_store %arg15[%c0_67, %c8_68], %193 {strides = array<i32>} : memref<8x32xf32, #tpu.memory_space<vmem>>, vector<8x8xf32>,
    %195 = vector.extract_strided_slice %140 {offsets = [0, 2], sizes = [8, 1], strides = [1, 1]} : vector<8x4xf32> to vector<8x1xf32>
    %196 = vector.extract_strided_slice %139 {offsets = [0, 2], sizes = [8, 1], strides = [1, 1]} : vector<8x4xf32> to vector<8x1xf32>
    %197 = tpu.transpose %196, [1, 0] : vector<8x1xf32> -> vector<1x8xf32>
    %198 = vector.broadcast %195 : vector<8x1xf32> to vector<8x8xf32>
    %199 = vector.broadcast %197 : vector<1x8xf32> to vector<8x8xf32>
    %200 = arith.addf %198, %199 : vector<8x8xf32>
    %cst_69 = arith.constant 0.000000e+00 : f32
    %201 = vector.broadcast %cst_69 : f32 to vector<8x8xf32>
    %202 = arith.cmpf ogt, %200, %201 : vector<8x8xf32>
    %cst_70 = arith.constant 2.000000e-01 : f32
    %203 = vector.broadcast %cst_70 : f32 to vector<8x8xf32>
    %204 = arith.mulf %203, %200 : vector<8x8xf32>
    %205 = arith.select %202, %200, %204 : vector<8x8xi1>, vector<8x8xf32>
    %206 = arith.addf %205, %134 : vector<8x8xf32>
    %cst_71 = arith.constant dense<0xFF800000> : vector<8xf32>
    %207 = vector.multi_reduction <maximumf>, %206, %cst_71 [1] : vector<8x8xf32> to vector<8xf32>
    %208 = vector.shape_cast %207 : vector<8xf32> to vector<8x1xf32>
    %209 = vector.broadcast %208 : vector<8x1xf32> to vector<8x8xf32>
    %210 = arith.subf %206, %209 : vector<8x8xf32>
    %211 = math.exp %210 : vector<8x8xf32>
    %cst_72 = arith.constant dense<0.000000e+00> : vector<8xf32>
    %212 = vector.multi_reduction <add>, %211, %cst_72 [1] : vector<8x8xf32> to vector<8xf32>
    %213 = vector.shape_cast %212 : vector<8xf32> to vector<8x1xf32>
    %cst_73 = arith.constant 9.99999968E-21 : f32
    %214 = vector.broadcast %cst_73 : f32 to vector<8x1xf32>
    %215 = arith.maximumf %213, %214 : vector<8x1xf32>
    %216 = tpu.reciprocal %215 {approx = true} : vector<8x1xf32> -> vector<8x1xf32>
    %217 = vector.broadcast %216 : vector<8x1xf32> to vector<8x8xf32>
    %218 = arith.mulf %211, %217 : vector<8x8xf32>
    %219 = vector.extract_strided_slice %136 {offsets = [0, 16], sizes = [8, 8], strides = [1, 1]} : vector<8x32xf32> to vector<8x8xf32>
    %cst_74 = arith.constant dense<0.000000e+00> : vector<8x8xf32>
    %220 = tpu.matmul %218, %219, %cst_74 {dimension_numbers = #tpu.dot_dimension_numbers<[1], [0], [0], [1], [0, 0, 1, 1], [], []>} : vector<8x8xf32>, vector<8x8xf32>, vector<8x8xf32> -> vector<8x8xf32>
    %c0_75 = arith.constant 0 : index
    %c16_76 = arith.constant 16 : index
    %221 = vector.load %arg15[%c0_75, %c16_76] : memref<8x32xf32, #tpu.memory_space<vmem>>, vector<8x8xf32>
    tpu.vector_store %arg15[%c0_75, %c16_76], %220 {strides = array<i32>} : memref<8x32xf32, #tpu.memory_space<vmem>>, vector<8x8xf32>,
    %222 = vector.extract_strided_slice %140 {offsets = [0, 3], sizes = [8, 1], strides = [1, 1]} : vector<8x4xf32> to vector<8x1xf32>
    %223 = vector.extract_strided_slice %139 {offsets = [0, 3], sizes = [8, 1], strides = [1, 1]} : vector<8x4xf32> to vector<8x1xf32>
    %224 = tpu.transpose %223, [1, 0] : vector<8x1xf32> -> vector<1x8xf32>
    %225 = vector.broadcast %222 : vector<8x1xf32> to vector<8x8xf32>
    %226 = vector.broadcast %224 : vector<1x8xf32> to vector<8x8xf32>
    %227 = arith.addf %225, %226 : vector<8x8xf32>
    %cst_77 = arith.constant 0.000000e+00 : f32
    %228 = vector.broadcast %cst_77 : f32 to vector<8x8xf32>
    %229 = arith.cmpf ogt, %227, %228 : vector<8x8xf32>
    %cst_78 = arith.constant 2.000000e-01 : f32
    %230 = vector.broadcast %cst_78 : f32 to vector<8x8xf32>
    %231 = arith.mulf %230, %227 : vector<8x8xf32>
    %232 = arith.select %229, %227, %231 : vector<8x8xi1>, vector<8x8xf32>
    %233 = arith.addf %232, %134 : vector<8x8xf32>
    %cst_79 = arith.constant dense<0xFF800000> : vector<8xf32>
    %234 = vector.multi_reduction <maximumf>, %233, %cst_79 [1] : vector<8x8xf32> to vector<8xf32>
    %235 = vector.shape_cast %234 : vector<8xf32> to vector<8x1xf32>
    %236 = vector.broadcast %235 : vector<8x1xf32> to vector<8x8xf32>
    %237 = arith.subf %233, %236 : vector<8x8xf32>
    %238 = math.exp %237 : vector<8x8xf32>
    %cst_80 = arith.constant dense<0.000000e+00> : vector<8xf32>
    %239 = vector.multi_reduction <add>, %238, %cst_80 [1] : vector<8x8xf32> to vector<8xf32>
    %240 = vector.shape_cast %239 : vector<8xf32> to vector<8x1xf32>
    %cst_81 = arith.constant 9.99999968E-21 : f32
    %241 = vector.broadcast %cst_81 : f32 to vector<8x1xf32>
    %242 = arith.maximumf %240, %241 : vector<8x1xf32>
    %243 = tpu.reciprocal %242 {approx = true} : vector<8x1xf32> -> vector<8x1xf32>
    %244 = vector.broadcast %243 : vector<8x1xf32> to vector<8x8xf32>
    %245 = arith.mulf %238, %244 : vector<8x8xf32>
    %246 = vector.extract_strided_slice %136 {offsets = [0, 24], sizes = [8, 8], strides = [1, 1]} : vector<8x32xf32> to vector<8x8xf32>
    %cst_82 = arith.constant dense<0.000000e+00> : vector<8x8xf32>
    %247 = tpu.matmul %245, %246, %cst_82 {dimension_numbers = #tpu.dot_dimension_numbers<[1], [0], [0], [1], [0, 0, 1, 1], [], []>} : vector<8x8xf32>, vector<8x8xf32>, vector<8x8xf32> -> vector<8x8xf32>
    %c0_83 = arith.constant 0 : index
    %c24_84 = arith.constant 24 : index
    %248 = vector.load %arg15[%c0_83, %c24_84] : memref<8x32xf32, #tpu.memory_space<vmem>>, vector<8x8xf32>
    tpu.vector_store %arg15[%c0_83, %c24_84], %247 {strides = array<i32>} : memref<8x32xf32, #tpu.memory_space<vmem>>, vector<8x8xf32>,
    %c0_85 = arith.constant 0 : index
    %c0_86 = arith.constant 0 : index
    %249 = vector.load %arg15[%c0_85, %c0_86] : memref<8x32xf32, #tpu.memory_space<vmem>>, vector<8x32xf32>
    %cst_87 = arith.constant dense<0xFF800000> : vector<8xf32>
    %250 = vector.multi_reduction <maximumf>, %134, %cst_87 [1] : vector<8x8xf32> to vector<8xf32>
    %251 = vector.shape_cast %250 : vector<8xf32> to vector<8x1xf32>
    %cst_88 = arith.constant -1.000000e+00 : f32
    %252 = vector.broadcast %cst_88 : f32 to vector<8x1xf32>
    %253 = arith.cmpf ogt, %251, %252 : vector<8x1xf32>
    %254 = arith.extui %253 : vector<8x1xi1> to vector<8x1xi32>
    %255 = arith.sitofp %254 : vector<8x1xi32> to vector<8x1xf32>
    %256 = vector.broadcast %255 : vector<8x1xf32> to vector<8x32xf32>
    %257 = arith.mulf %249, %256 : vector<8x32xf32>
    %258 = arith.addf %257, %133 : vector<8x32xf32>
    %c0_89 = arith.constant 0 : index
    %c0_90 = arith.constant 0 : index
    %259 = vector.load %arg9[%c0_89, %c0_90] : memref<1x32xf32, #tpu.memory_space<vmem>>, vector<1x32xf32>
    %260 = vector.broadcast %259 : vector<1x32xf32> to vector<8x32xf32>
    %261 = arith.addf %258, %260 : vector<8x32xf32>
    %cst_91 = arith.constant 0.000000e+00 : f32
    %262 = vector.broadcast %cst_91 : f32 to vector<8x32xf32>
    %263 = arith.cmpf ogt, %261, %262 : vector<8x32xf32>
    %264 = math.exp %261 : vector<8x32xf32>
    %cst_92 = arith.constant 1.000000e+00 : f32
    %265 = vector.broadcast %cst_92 : f32 to vector<8x32xf32>
    %266 = arith.subf %264, %265 : vector<8x32xf32>
    %267 = arith.select %263, %261, %266 : vector<8x32xi1>, vector<8x32xf32>
    %c0_93 = arith.constant 0 : index
    %c0_94 = arith.constant 0 : index
    %268 = vector.load %arg3[%c0_93, %c0_94] : memref<8x8xf32, #tpu.memory_space<vmem>>, vector<8x8xf32>
    %c0_95 = arith.constant 0 : index
    %c0_96 = arith.constant 0 : index
    %269 = vector.load %arg10[%c0_95, %c0_96] : memref<32x24xf32, #tpu.memory_space<vmem>>, vector<32x24xf32>
    %cst_97 = arith.constant dense<0.000000e+00> : vector<8x24xf32>
    %270 = tpu.matmul %267, %269, %cst_97 {dimension_numbers = #tpu.dot_dimension_numbers<[1], [0], [0], [1], [0, 0, 1, 1], [], []>} : vector<8x32xf32>, vector<32x24xf32>, vector<8x24xf32> -> vector<8x24xf32>
    %c0_98 = arith.constant 0 : index
    %c0_99 = arith.constant 0 : index
    %271 = vector.load %arg11[%c0_98, %c0_99] : memref<24x12xf32, #tpu.memory_space<vmem>>, vector<24x12xf32>
    %cst_100 = arith.constant dense<0.000000e+00> : vector<8x12xf32>
    %272 = tpu.matmul %270, %271, %cst_100 {dimension_numbers = #tpu.dot_dimension_numbers<[1], [0], [0], [1], [0, 0, 1, 1], [], []>} : vector<8x24xf32>, vector<24x12xf32>, vector<8x12xf32> -> vector<8x12xf32>
    %273 = vector.extract_strided_slice %272 {offsets = [0, 0], sizes = [8, 6], strides = [1, 1]} : vector<8x12xf32> to vector<8x6xf32>
    %274 = vector.extract_strided_slice %272 {offsets = [0, 6], sizes = [8, 6], strides = [1, 1]} : vector<8x12xf32> to vector<8x6xf32>
    %cst_101 = arith.constant 0.000000e+00 : f32
    %275 = vector.broadcast %cst_101 : f32 to vector<8x4xf32>
    %276 = vector.extract_strided_slice %274 {offsets = [0, 0], sizes = [8, 1], strides = [1, 1]} : vector<8x6xf32> to vector<8x1xf32>
    %277 = vector.extract_strided_slice %273 {offsets = [0, 0], sizes = [8, 1], strides = [1, 1]} : vector<8x6xf32> to vector<8x1xf32>
    %278 = tpu.transpose %277, [1, 0] : vector<8x1xf32> -> vector<1x8xf32>
    %279 = vector.broadcast %276 : vector<8x1xf32> to vector<8x8xf32>
    %280 = vector.broadcast %278 : vector<1x8xf32> to vector<8x8xf32>
    %281 = arith.addf %279, %280 : vector<8x8xf32>
    %cst_102 = arith.constant 0.000000e+00 : f32
    %282 = vector.broadcast %cst_102 : f32 to vector<8x8xf32>
    %283 = arith.cmpf ogt, %281, %282 : vector<8x8xf32>
    %cst_103 = arith.constant 2.000000e-01 : f32
    %284 = vector.broadcast %cst_103 : f32 to vector<8x8xf32>
    %285 = arith.mulf %284, %281 : vector<8x8xf32>
    %286 = arith.select %283, %281, %285 : vector<8x8xi1>, vector<8x8xf32>
    %287 = arith.addf %286, %268 : vector<8x8xf32>
    %cst_104 = arith.constant dense<0xFF800000> : vector<8xf32>
    %288 = vector.multi_reduction <maximumf>, %287, %cst_104 [1] : vector<8x8xf32> to vector<8xf32>
    %289 = vector.shape_cast %288 : vector<8xf32> to vector<8x1xf32>
    %290 = vector.broadcast %289 : vector<8x1xf32> to vector<8x8xf32>
    %291 = arith.subf %287, %290 : vector<8x8xf32>
    %292 = math.exp %291 : vector<8x8xf32>
    %cst_105 = arith.constant dense<0.000000e+00> : vector<8xf32>
    %293 = vector.multi_reduction <add>, %292, %cst_105 [1] : vector<8x8xf32> to vector<8xf32>
    %294 = vector.shape_cast %293 : vector<8xf32> to vector<8x1xf32>
    %cst_106 = arith.constant 9.99999968E-21 : f32
    %295 = vector.broadcast %cst_106 : f32 to vector<8x1xf32>
    %296 = arith.maximumf %294, %295 : vector<8x1xf32>
    %297 = tpu.reciprocal %296 {approx = true} : vector<8x1xf32> -> vector<8x1xf32>
    %298 = vector.broadcast %297 : vector<8x1xf32> to vector<8x8xf32>
    %299 = arith.mulf %292, %298 : vector<8x8xf32>
    %300 = vector.extract_strided_slice %270 {offsets = [0, 0], sizes = [8, 4], strides = [1, 1]} : vector<8x24xf32> to vector<8x4xf32>
    %cst_107 = arith.constant dense<0.000000e+00> : vector<8x4xf32>
    %301 = tpu.matmul %299, %300, %cst_107 {dimension_numbers = #tpu.dot_dimension_numbers<[1], [0], [0], [1], [0, 0, 1, 1], [], []>} : vector<8x8xf32>, vector<8x4xf32>, vector<8x4xf32> -> vector<8x4xf32>
    %302 = arith.addf %275, %301 : vector<8x4xf32>
    %303 = vector.extract_strided_slice %274 {offsets = [0, 1], sizes = [8, 1], strides = [1, 1]} : vector<8x6xf32> to vector<8x1xf32>
    %304 = vector.extract_strided_slice %273 {offsets = [0, 1], sizes = [8, 1], strides = [1, 1]} : vector<8x6xf32> to vector<8x1xf32>
    %305 = tpu.transpose %304, [1, 0] : vector<8x1xf32> -> vector<1x8xf32>
    %306 = vector.broadcast %303 : vector<8x1xf32> to vector<8x8xf32>
    %307 = vector.broadcast %305 : vector<1x8xf32> to vector<8x8xf32>
    %308 = arith.addf %306, %307 : vector<8x8xf32>
    %cst_108 = arith.constant 0.000000e+00 : f32
    %309 = vector.broadcast %cst_108 : f32 to vector<8x8xf32>
    %310 = arith.cmpf ogt, %308, %309 : vector<8x8xf32>
    %cst_109 = arith.constant 2.000000e-01 : f32
    %311 = vector.broadcast %cst_109 : f32 to vector<8x8xf32>
    %312 = arith.mulf %311, %308 : vector<8x8xf32>
    %313 = arith.select %310, %308, %312 : vector<8x8xi1>, vector<8x8xf32>
    %314 = arith.addf %313, %268 : vector<8x8xf32>
    %cst_110 = arith.constant dense<0xFF800000> : vector<8xf32>
    %315 = vector.multi_reduction <maximumf>, %314, %cst_110 [1] : vector<8x8xf32> to vector<8xf32>
    %316 = vector.shape_cast %315 : vector<8xf32> to vector<8x1xf32>
    %317 = vector.broadcast %316 : vector<8x1xf32> to vector<8x8xf32>
    %318 = arith.subf %314, %317 : vector<8x8xf32>
    %319 = math.exp %318 : vector<8x8xf32>
    %cst_111 = arith.constant dense<0.000000e+00> : vector<8xf32>
    %320 = vector.multi_reduction <add>, %319, %cst_111 [1] : vector<8x8xf32> to vector<8xf32>
    %321 = vector.shape_cast %320 : vector<8xf32> to vector<8x1xf32>
    %cst_112 = arith.constant 9.99999968E-21 : f32
    %322 = vector.broadcast %cst_112 : f32 to vector<8x1xf32>
    %323 = arith.maximumf %321, %322 : vector<8x1xf32>
    %324 = tpu.reciprocal %323 {approx = true} : vector<8x1xf32> -> vector<8x1xf32>
    %325 = vector.broadcast %324 : vector<8x1xf32> to vector<8x8xf32>
    %326 = arith.mulf %319, %325 : vector<8x8xf32>
    %327 = vector.extract_strided_slice %270 {offsets = [0, 4], sizes = [8, 4], strides = [1, 1]} : vector<8x24xf32> to vector<8x4xf32>
    %cst_113 = arith.constant dense<0.000000e+00> : vector<8x4xf32>
    %328 = tpu.matmul %326, %327, %cst_113 {dimension_numbers = #tpu.dot_dimension_numbers<[1], [0], [0], [1], [0, 0, 1, 1], [], []>} : vector<8x8xf32>, vector<8x4xf32>, vector<8x4xf32> -> vector<8x4xf32>
    %329 = arith.addf %302, %328 : vector<8x4xf32>
    %330 = vector.extract_strided_slice %274 {offsets = [0, 2], sizes = [8, 1], strides = [1, 1]} : vector<8x6xf32> to vector<8x1xf32>
    %331 = vector.extract_strided_slice %273 {offsets = [0, 2], sizes = [8, 1], strides = [1, 1]} : vector<8x6xf32> to vector<8x1xf32>
    %332 = tpu.transpose %331, [1, 0] : vector<8x1xf32> -> vector<1x8xf32>
    %333 = vector.broadcast %330 : vector<8x1xf32> to vector<8x8xf32>
    %334 = vector.broadcast %332 : vector<1x8xf32> to vector<8x8xf32>
    %335 = arith.addf %333, %334 : vector<8x8xf32>
    %cst_114 = arith.constant 0.000000e+00 : f32
    %336 = vector.broadcast %cst_114 : f32 to vector<8x8xf32>
    %337 = arith.cmpf ogt, %335, %336 : vector<8x8xf32>
    %cst_115 = arith.constant 2.000000e-01 : f32
    %338 = vector.broadcast %cst_115 : f32 to vector<8x8xf32>
    %339 = arith.mulf %338, %335 : vector<8x8xf32>
    %340 = arith.select %337, %335, %339 : vector<8x8xi1>, vector<8x8xf32>
    %341 = arith.addf %340, %268 : vector<8x8xf32>
    %cst_116 = arith.constant dense<0xFF800000> : vector<8xf32>
    %342 = vector.multi_reduction <maximumf>, %341, %cst_116 [1] : vector<8x8xf32> to vector<8xf32>
    %343 = vector.shape_cast %342 : vector<8xf32> to vector<8x1xf32>
    %344 = vector.broadcast %343 : vector<8x1xf32> to vector<8x8xf32>
    %345 = arith.subf %341, %344 : vector<8x8xf32>
    %346 = math.exp %345 : vector<8x8xf32>
    %cst_117 = arith.constant dense<0.000000e+00> : vector<8xf32>
    %347 = vector.multi_reduction <add>, %346, %cst_117 [1] : vector<8x8xf32> to vector<8xf32>
    %348 = vector.shape_cast %347 : vector<8xf32> to vector<8x1xf32>
    %cst_118 = arith.constant 9.99999968E-21 : f32
    %349 = vector.broadcast %cst_118 : f32 to vector<8x1xf32>
    %350 = arith.maximumf %348, %349 : vector<8x1xf32>
    %351 = tpu.reciprocal %350 {approx = true} : vector<8x1xf32> -> vector<8x1xf32>
    %352 = vector.broadcast %351 : vector<8x1xf32> to vector<8x8xf32>
    %353 = arith.mulf %346, %352 : vector<8x8xf32>
    %354 = vector.extract_strided_slice %270 {offsets = [0, 8], sizes = [8, 4], strides = [1, 1]} : vector<8x24xf32> to vector<8x4xf32>
    %cst_119 = arith.constant dense<0.000000e+00> : vector<8x4xf32>
    %355 = tpu.matmul %353, %354, %cst_119 {dimension_numbers = #tpu.dot_dimension_numbers<[1], [0], [0], [1], [0, 0, 1, 1], [], []>} : vector<8x8xf32>, vector<8x4xf32>, vector<8x4xf32> -> vector<8x4xf32>
    %356 = arith.addf %329, %355 : vector<8x4xf32>
    %357 = vector.extract_strided_slice %274 {offsets = [0, 3], sizes = [8, 1], strides = [1, 1]} : vector<8x6xf32> to vector<8x1xf32>
    %358 = vector.extract_strided_slice %273 {offsets = [0, 3], sizes = [8, 1], strides = [1, 1]} : vector<8x6xf32> to vector<8x1xf32>
    %359 = tpu.transpose %358, [1, 0] : vector<8x1xf32> -> vector<1x8xf32>
    %360 = vector.broadcast %357 : vector<8x1xf32> to vector<8x8xf32>
    %361 = vector.broadcast %359 : vector<1x8xf32> to vector<8x8xf32>
    %362 = arith.addf %360, %361 : vector<8x8xf32>
    %cst_120 = arith.constant 0.000000e+00 : f32
    %363 = vector.broadcast %cst_120 : f32 to vector<8x8xf32>
    %364 = arith.cmpf ogt, %362, %363 : vector<8x8xf32>
    %cst_121 = arith.constant 2.000000e-01 : f32
    %365 = vector.broadcast %cst_121 : f32 to vector<8x8xf32>
    %366 = arith.mulf %365, %362 : vector<8x8xf32>
    %367 = arith.select %364, %362, %366 : vector<8x8xi1>, vector<8x8xf32>
    %368 = arith.addf %367, %268 : vector<8x8xf32>
    %cst_122 = arith.constant dense<0xFF800000> : vector<8xf32>
    %369 = vector.multi_reduction <maximumf>, %368, %cst_122 [1] : vector<8x8xf32> to vector<8xf32>
    %370 = vector.shape_cast %369 : vector<8xf32> to vector<8x1xf32>
    %371 = vector.broadcast %370 : vector<8x1xf32> to vector<8x8xf32>
    %372 = arith.subf %368, %371 : vector<8x8xf32>
    %373 = math.exp %372 : vector<8x8xf32>
    %cst_123 = arith.constant dense<0.000000e+00> : vector<8xf32>
    %374 = vector.multi_reduction <add>, %373, %cst_123 [1] : vector<8x8xf32> to vector<8xf32>
    %375 = vector.shape_cast %374 : vector<8xf32> to vector<8x1xf32>
    %cst_124 = arith.constant 9.99999968E-21 : f32
    %376 = vector.broadcast %cst_124 : f32 to vector<8x1xf32>
    %377 = arith.maximumf %375, %376 : vector<8x1xf32>
    %378 = tpu.reciprocal %377 {approx = true} : vector<8x1xf32> -> vector<8x1xf32>
    %379 = vector.broadcast %378 : vector<8x1xf32> to vector<8x8xf32>
    %380 = arith.mulf %373, %379 : vector<8x8xf32>
    %381 = vector.extract_strided_slice %270 {offsets = [0, 12], sizes = [8, 4], strides = [1, 1]} : vector<8x24xf32> to vector<8x4xf32>
    %cst_125 = arith.constant dense<0.000000e+00> : vector<8x4xf32>
    %382 = tpu.matmul %380, %381, %cst_125 {dimension_numbers = #tpu.dot_dimension_numbers<[1], [0], [0], [1], [0, 0, 1, 1], [], []>} : vector<8x8xf32>, vector<8x4xf32>, vector<8x4xf32> -> vector<8x4xf32>
    %383 = arith.addf %356, %382 : vector<8x4xf32>
    %384 = vector.extract_strided_slice %274 {offsets = [0, 4], sizes = [8, 1], strides = [1, 1]} : vector<8x6xf32> to vector<8x1xf32>
    %385 = vector.extract_strided_slice %273 {offsets = [0, 4], sizes = [8, 1], strides = [1, 1]} : vector<8x6xf32> to vector<8x1xf32>
    %386 = tpu.transpose %385, [1, 0] : vector<8x1xf32> -> vector<1x8xf32>
    %387 = vector.broadcast %384 : vector<8x1xf32> to vector<8x8xf32>
    %388 = vector.broadcast %386 : vector<1x8xf32> to vector<8x8xf32>
    %389 = arith.addf %387, %388 : vector<8x8xf32>
    %cst_126 = arith.constant 0.000000e+00 : f32
    %390 = vector.broadcast %cst_126 : f32 to vector<8x8xf32>
    %391 = arith.cmpf ogt, %389, %390 : vector<8x8xf32>
    %cst_127 = arith.constant 2.000000e-01 : f32
    %392 = vector.broadcast %cst_127 : f32 to vector<8x8xf32>
    %393 = arith.mulf %392, %389 : vector<8x8xf32>
    %394 = arith.select %391, %389, %393 : vector<8x8xi1>, vector<8x8xf32>
    %395 = arith.addf %394, %268 : vector<8x8xf32>
    %cst_128 = arith.constant dense<0xFF800000> : vector<8xf32>
    %396 = vector.multi_reduction <maximumf>, %395, %cst_128 [1] : vector<8x8xf32> to vector<8xf32>
    %397 = vector.shape_cast %396 : vector<8xf32> to vector<8x1xf32>
    %398 = vector.broadcast %397 : vector<8x1xf32> to vector<8x8xf32>
    %399 = arith.subf %395, %398 : vector<8x8xf32>
    %400 = math.exp %399 : vector<8x8xf32>
    %cst_129 = arith.constant dense<0.000000e+00> : vector<8xf32>
    %401 = vector.multi_reduction <add>, %400, %cst_129 [1] : vector<8x8xf32> to vector<8xf32>
    %402 = vector.shape_cast %401 : vector<8xf32> to vector<8x1xf32>
    %cst_130 = arith.constant 9.99999968E-21 : f32
    %403 = vector.broadcast %cst_130 : f32 to vector<8x1xf32>
    %404 = arith.maximumf %402, %403 : vector<8x1xf32>
    %405 = tpu.reciprocal %404 {approx = true} : vector<8x1xf32> -> vector<8x1xf32>
    %406 = vector.broadcast %405 : vector<8x1xf32> to vector<8x8xf32>
    %407 = arith.mulf %400, %406 : vector<8x8xf32>
    %408 = vector.extract_strided_slice %270 {offsets = [0, 16], sizes = [8, 4], strides = [1, 1]} : vector<8x24xf32> to vector<8x4xf32>
    %cst_131 = arith.constant dense<0.000000e+00> : vector<8x4xf32>
    %409 = tpu.matmul %407, %408, %cst_131 {dimension_numbers = #tpu.dot_dimension_numbers<[1], [0], [0], [1], [0, 0, 1, 1], [], []>} : vector<8x8xf32>, vector<8x4xf32>, vector<8x4xf32> -> vector<8x4xf32>
    %410 = arith.addf %383, %409 : vector<8x4xf32>
    %411 = vector.extract_strided_slice %274 {offsets = [0, 5], sizes = [8, 1], strides = [1, 1]} : vector<8x6xf32> to vector<8x1xf32>
    %412 = vector.extract_strided_slice %273 {offsets = [0, 5], sizes = [8, 1], strides = [1, 1]} : vector<8x6xf32> to vector<8x1xf32>
    %413 = tpu.transpose %412, [1, 0] : vector<8x1xf32> -> vector<1x8xf32>
    %414 = vector.broadcast %411 : vector<8x1xf32> to vector<8x8xf32>
    %415 = vector.broadcast %413 : vector<1x8xf32> to vector<8x8xf32>
    %416 = arith.addf %414, %415 : vector<8x8xf32>
    %cst_132 = arith.constant 0.000000e+00 : f32
    %417 = vector.broadcast %cst_132 : f32 to vector<8x8xf32>
    %418 = arith.cmpf ogt, %416, %417 : vector<8x8xf32>
    %cst_133 = arith.constant 2.000000e-01 : f32
    %419 = vector.broadcast %cst_133 : f32 to vector<8x8xf32>
    %420 = arith.mulf %419, %416 : vector<8x8xf32>
    %421 = arith.select %418, %416, %420 : vector<8x8xi1>, vector<8x8xf32>
    %422 = arith.addf %421, %268 : vector<8x8xf32>
    %cst_134 = arith.constant dense<0xFF800000> : vector<8xf32>
    %423 = vector.multi_reduction <maximumf>, %422, %cst_134 [1] : vector<8x8xf32> to vector<8xf32>
    %424 = vector.shape_cast %423 : vector<8xf32> to vector<8x1xf32>
    %425 = vector.broadcast %424 : vector<8x1xf32> to vector<8x8xf32>
    %426 = arith.subf %422, %425 : vector<8x8xf32>
    %427 = math.exp %426 : vector<8x8xf32>
    %cst_135 = arith.constant dense<0.000000e+00> : vector<8xf32>
    %428 = vector.multi_reduction <add>, %427, %cst_135 [1] : vector<8x8xf32> to vector<8xf32>
    %429 = vector.shape_cast %428 : vector<8xf32> to vector<8x1xf32>
    %cst_136 = arith.constant 9.99999968E-21 : f32
    %430 = vector.broadcast %cst_136 : f32 to vector<8x1xf32>
    %431 = arith.maximumf %429, %430 : vector<8x1xf32>
    %432 = tpu.reciprocal %431 {approx = true} : vector<8x1xf32> -> vector<8x1xf32>
    %433 = vector.broadcast %432 : vector<8x1xf32> to vector<8x8xf32>
    %434 = arith.mulf %427, %433 : vector<8x8xf32>
    %435 = vector.extract_strided_slice %270 {offsets = [0, 20], sizes = [8, 4], strides = [1, 1]} : vector<8x24xf32> to vector<8x4xf32>
    %cst_137 = arith.constant dense<0.000000e+00> : vector<8x4xf32>
    %436 = tpu.matmul %434, %435, %cst_137 {dimension_numbers = #tpu.dot_dimension_numbers<[1], [0], [0], [1], [0, 0, 1, 1], [], []>} : vector<8x8xf32>, vector<8x4xf32>, vector<8x4xf32> -> vector<8x4xf32>
    %437 = arith.addf %410, %436 : vector<8x4xf32>
    %c0_138 = arith.constant 0 : index
    %c0_139 = arith.constant 0 : index
    %438 = vector.load %arg12[%c0_138, %c0_139] : memref<32x24xf32, #tpu.memory_space<vmem>>, vector<32x24xf32>
    %cst_140 = arith.constant dense<0.000000e+00> : vector<8x24xf32>
    %439 = tpu.matmul %267, %438, %cst_140 {dimension_numbers = #tpu.dot_dimension_numbers<[1], [0], [0], [1], [0, 0, 1, 1], [], []>} : vector<8x32xf32>, vector<32x24xf32>, vector<8x24xf32> -> vector<8x24xf32>
    %c0_141 = arith.constant 0 : index
    %c0_142 = arith.constant 0 : index
    %440 = vector.load %arg13[%c0_141, %c0_142] : memref<1x24xf32, #tpu.memory_space<vmem>>, vector<1x24xf32>
    %441 = vector.broadcast %440 : vector<1x24xf32> to vector<8x24xf32>
    %442 = arith.addf %439, %441 : vector<8x24xf32>
    %cst_143 = arith.constant 0.000000e+00 : f32
    %443 = vector.broadcast %cst_143 : f32 to vector<8x4xf32>
    %444 = vector.extract_strided_slice %442 {offsets = [0, 0], sizes = [8, 4], strides = [1, 1]} : vector<8x24xf32> to vector<8x4xf32>
    %445 = arith.addf %443, %444 : vector<8x4xf32>
    %446 = vector.extract_strided_slice %442 {offsets = [0, 4], sizes = [8, 4], strides = [1, 1]} : vector<8x24xf32> to vector<8x4xf32>
    %447 = arith.addf %445, %446 : vector<8x4xf32>
    %448 = vector.extract_strided_slice %442 {offsets = [0, 8], sizes = [8, 4], strides = [1, 1]} : vector<8x24xf32> to vector<8x4xf32>
    %449 = arith.addf %447, %448 : vector<8x4xf32>
    %450 = vector.extract_strided_slice %442 {offsets = [0, 12], sizes = [8, 4], strides = [1, 1]} : vector<8x24xf32> to vector<8x4xf32>
    %451 = arith.addf %449, %450 : vector<8x4xf32>
    %452 = vector.extract_strided_slice %442 {offsets = [0, 16], sizes = [8, 4], strides = [1, 1]} : vector<8x24xf32> to vector<8x4xf32>
    %453 = arith.addf %451, %452 : vector<8x4xf32>
    %454 = vector.extract_strided_slice %442 {offsets = [0, 20], sizes = [8, 4], strides = [1, 1]} : vector<8x24xf32> to vector<8x4xf32>
    %455 = arith.addf %453, %454 : vector<8x4xf32>
    %cst_144 = arith.constant dense<0xFF800000> : vector<8xf32>
    %456 = vector.multi_reduction <maximumf>, %268, %cst_144 [1] : vector<8x8xf32> to vector<8xf32>
    %457 = vector.shape_cast %456 : vector<8xf32> to vector<8x1xf32>
    %cst_145 = arith.constant -1.000000e+00 : f32
    %458 = vector.broadcast %cst_145 : f32 to vector<8x1xf32>
    %459 = arith.cmpf ogt, %457, %458 : vector<8x1xf32>
    %460 = arith.extui %459 : vector<8x1xi1> to vector<8x1xi32>
    %461 = arith.sitofp %460 : vector<8x1xi32> to vector<8x1xf32>
    %462 = vector.broadcast %461 : vector<8x1xf32> to vector<8x4xf32>
    %463 = arith.mulf %437, %462 : vector<8x4xf32>
    %464 = arith.addf %463, %455 : vector<8x4xf32>
    %cst_146 = arith.constant 0.166666672 : f32
    %465 = vector.broadcast %cst_146 : f32 to vector<8x4xf32>
    %466 = arith.mulf %464, %465 : vector<8x4xf32>
    %c0_147 = arith.constant 0 : index
    %c0_148 = arith.constant 0 : index
    %467 = vector.load %arg14[%c0_147, %c0_148] : memref<8x4xf32, #tpu.memory_space<vmem>>, vector<8x4xf32>
    tpu.vector_store %arg14[%c0_147, %c0_148], %466 {strides = array<i32>} : memref<8x4xf32, #tpu.memory_space<vmem>>, vector<8x4xf32>,
    return
  }
}

</mosaic_0001>

<bundles_post_ra>
// kernel: tpu_custom_call.1
= control target key start
LH: loop header
LB: loop body
LE: loop exit
PB: predicated region body
PF: predicated region fallthrough
CT: control target
= control target key end

     0   :  { %v2976_v0 = vmov 0.0|0.0   ;;  %vm2977_vm0 = vmmov 0   ;;  %v2978_v3 = vmov 0.0   ;;  %vm51_vm1 = vcmask 130048   ;;  %s2983_s26 = smov 126   ;;  %s2987_s29 = smov 104   ;;  %s3411_s4 = inlined_call_operand.vmem [shape: f32[16,32], index: 4, kind: input, shape index: {}]   ;;  %s3412_s5 = inlined_call_operand.vmem [shape: f32[32,8], index: 5, kind: input, shape index: {}]   ;;  %s3413_s0 = inlined_call_operand.vmem [shape: f32[8,16], index: 0, kind: input, shape index: {}]   ;;  %s3414_s1 = inlined_call_operand.vmem [shape: f32[8,8], index: 1, kind: input, shape index: {}]   ;;  %s3415_s7 = inlined_call_operand.vmem [shape: f32[32,32], index: 7, kind: input, shape index: {}]   ;;  %s3416_s8 = inlined_call_operand.vmem [shape: f32[32,8], index: 8, kind: input, shape index: {}]   ;;  %s3417_s6 = inlined_call_operand.vmem [shape: f32[1,32], index: 6, kind: input, shape index: {}]   ;;  %s3418_s2 = inlined_call_operand.vmem [shape: f32[8,8], index: 2, kind: input, shape index: {}]   ;;  %s3419_s10 = inlined_call_operand.vmem [shape: f32[32,24], index: 10, kind: input, shape index: {}]   ;;  %s3420_s11 = inlined_call_operand.vmem [shape: f32[24,12], index: 11, kind: input, shape index: {}]   ;;  %s3421_s9 = inlined_call_operand.vmem [shape: f32[1,32], index: 9, kind: input, shape index: {}]   ;;  %s3422_s12 = inlined_call_operand.vmem [shape: f32[32,24], index: 12, kind: input, shape index: {}]   ;;  %s3423_s3 = inlined_call_operand.vmem [shape: f32[8,8], index: 3, kind: input, shape index: {}]   ;;  %s3424_s13 = inlined_call_operand.vmem [shape: f32[1,24], index: 13, kind: input, shape index: {}]   ;;  %s3425_s14 = inlined_call_operand.vmem [shape: f32[8,4], index: 14, kind: output, shape index: {}]  }
   0x1   :  { %2833 = vmatprep.subr.bf16.mxu0 %v2976_v0  ;;  %v49_v1 = vld [vmem:[%s3411_s4] sm:$0xff]  ;;  %v50_v2 = vld [vmem:[%s3411_s4 + $0x8] sm:$0xff]  ;;  %2696 = vmatprep.mubr.msk.f32.mxu0 %vm2977_vm0, %v2978_v3  ;;  %v127_v9 = vld [vmem:[%s3412_s5 + $0x10] sm:$0xff]  ;;  %vm129_vm2 = vcmask 261120   ;;  %v2979_v14 = vmov 4   ;;  %v2980_v15 = vmov 5   ;;  %v240_v23 = vlaneseq }
   0x2   :  { %v2834_v4 = vpack.c.bf16 %v50_v2, %v49_v1  ;;  %v125_v5 = vld [vmem:[%s3412_s5] sm:$0xff]  ;;  %v126_v6 = vld [vmem:[%s3412_s5 + $0x8] sm:$0xff]  ;;  %2720 = vmatprep.subr.mxu1 %v2978_v3  ;;  %2722 = vmatprep.mubr.msk.f32.mxu1 %vm2977_vm0, %v2978_v3  ;;  %v128_v10 = vld [vmem:[%s3412_s5 + $0x18] sm:$0xff]  ;;  %s2982_s5 = smov 127   ;;  %v2984_v18 = vmov 6   ;;  %v2985_v19 = vmov 7  }
   0x3   :  { %v47_v7 = vld [vmem:[%s3413_s0] sm:$0xff]  ;;  %v2837_v8 = vpack.c.bf16 %v126_v6, %v125_v5  ;;  %v2840_v11 = vpack.c.bf16 %v128_v10, %v127_v9  ;;  %2903 = vset.pattern.permute.xlu1 %v2979_v14  ;;  %2904 = vset.pattern.permute.xlu0 %v2980_v15  ;;  %s2981_s0 = smov 125   ;;  %v241_v24 = vshrl.u32 %v240_v23, 7  ;;  %vm249_vm4 = vcmask 64512   ;;  %s2988_s30 = smov 112  }
   0x4   :  { %2835 = vmatpush3.bf16.msra.mxu0 %v2834_v4  ;;  %v3126_v32 = vld [vmem:[%s3414_s1] sm:$0xff]  ;;  %s2986_s1 = smov 120   ;;  %s2989_s15 = smov 8   ;;  %vm476_vm8 = vcmask 130112   ;;  %vm618_vm9 = vcmask 195712   ;;  %vm760_vm10 = vcmask 261312  }
   0x5   :  { %2836 = vmatprep.subr.bf16.mxu0 %v2976_v0  ;;  %v3120_v26 = vsub.s32 0, %v241_v24  ;;  %s2990_s16 = smov 16   ;;  %s2991_s17 = smov 24  }
   0x6   :  { %s2992_s23 = smov 124   ;;  %s2999_s25 = smov 108  }
   0x7   :  { %2697 = vmatmul.mubr.msk.f32.vlgmr.msra.gmra.mrb[0].mxu0 %vm51_vm1, %v47_v7 }
   0x8   :  { %2838 = vmatpush3.bf16.msra.mxu0 %v2837_v8  ;;  %2707 = vmatprep.mubr.msk.f32.mxu0 %vm2977_vm0, %v2978_v3 }
   0x9   :  { %2839 = vmatprep.subr.bf16.mxu0 %v2976_v0 }
   0xc   :  { %2841 = vmatpush3.bf16.msra.mxu0 %v2840_v11 }
   0xd   :  { %2710 = vmatprep.subr.mxu0 %v2978_v3 }
  0xda   :  { %v3107_v12 = vpop.f32.mrb[0].mxu0 }
  0xdb   :  { %v2698_v13 = vpop.f32.mrb[1].mxu0  ;;  %2708 = vmatmul.mubr.msk.f32.vlgmr.msra.gmra.mrb[2].mxu0 %vm129_vm2, %v3107_v12 }
  0xdc   :  { %2711 = vmatpush3.msra.mxu0 %v3107_v12  ;;  %2712 = vmatprep.mubr.msk.f32.mxu0 %vm2977_vm0, %v2978_v3 }
  0xdd   :  { %2715 = vmatprep.subr.mxu0 %v2978_v3 }
 0x1ae   :  { %v199_v16 = vpop.f32.mrb[2].mxu0 }
 0x1af   :  { %620 = vrot.lane.b32.xlu1 %v199_v16, %s2981_s0  ;;  %336 = vrot.lane.b32.xlu0 %v199_v16, %s2982_s5  ;;  %v2709_v17 = vpop.f32.mrb[3].mxu0 }
 0x1b3   :  { %237 = vperm.xlu1 %2903, %v199_v16   ;;  %478 = vrot.lane.b32.xlu0 %v199_v16, %s2983_s26 }
 0x1b7   :  { %2905 = vset.pattern.permute.xlu1 %v2984_v18  ;;  %372 = vperm.xlu0 %2904, %v199_v16  }
 0x1b8   :  { %514 = vperm.xlu1 %2905, %v199_v16  }
 0x1bc   :  { %2906 = vset.pattern.permute.xlu1 %v2985_v19 }
 0x1bd   :  { %656 = vperm.xlu1 %2906, %v199_v16  }
 0x1d5   :  { %203 = vxpose.xlu0.b32.start.end [1/1] (short) (narrow) %v199_v16, 8 }
 0x221   :  { %v337_v20 = vpop.permute.xlu0 %336  ;;  %v621_v22 = vpop.permute.xlu1 %620 }
 0x222   :  { %339 = vxpose.xlu1.b32.start.end [1/1] (short) (narrow) %v337_v20, 8 }
 0x225   :  { %v479_v21 = vpop.permute.xlu0 %478 }
 0x226   :  { %481 = vxpose.xlu0.b32.start.end [1/1] (short) (narrow) %v479_v21, 8 }
 0x22a   :  { %623 = vxpose.xlu0.b32.start.end [1/1] (short) (narrow) %v621_v22, 8 }
 0x232   :  { %v238_v29 = vpop.permute.xlu1 %237 }
 0x236   :  { %v373_v25 = vpop.permute.xlu0 %372 }
 0x237   :  { %v515_v36 = vpop.permute.xlu1 %514 }
 0x23c   :  { %v657_v37 = vpop.permute.xlu1 %656 }
 0x240   :  { %2909 = vset.pattern.permute.xlu1 %v2984_v18 }
 0x253   :  { %2907 = vset.pattern.permute.xlu0 %v2979_v14 }
 0x255   :  { %v219_v27 = vpop.trf.xlu0 }
 0x256   :  { %v243_v28 = vrot.slane %v219_v27, %v3120_v26 }
 0x258   :  { %v244_v30 = vadd.f32 %v243_v28, %v238_v29 }
 0x25a   :  { %v246_v31 = vmul.f32 0.2, %v244_v30  ;;  %vm245_vm3 = vcmp.gt.f32.partialorder %v244_v30, 0.0 }
 0x25c   :  { %v247_v33 = vsel %vm245_vm3, %v244_v30, %v246_v31 }
 0x25d   :  { %v248_v34 = vadd.f32 %v247_v33, %v3126_v32 }
 0x25f   :  { %v250_v35 = vsel %vm249_vm4, %v248_v34, -inf }
 0x260   :  { %251 = vmax.xlane.f32.xlu0 %v250_v35 }
 0x2a2   :  { %v355_v38 = vpop.trf.xlu1 }
 0x2a3   :  { %v378_v39 = vrot.slane %v355_v38, %v3120_v26 }
 0x2a5   :  { %v379_v40 = vadd.f32 %v378_v39, %v373_v25 }
 0x2a6   :  { %v497_v41 = vpop.trf.xlu0 }
 0x2a7   :  { %v381_v42 = vmul.f32 0.2, %v379_v40  ;;  %v520_v43 = vrot.slane %v497_v41, %v3120_v26  ;;  %vm380_vm5 = vcmp.gt.f32.partialorder %v379_v40, 0.0 }
 0x2a9   :  { %v521_v44 = vadd.f32 %v520_v43, %v515_v36  ;;  %v382_v45 = vsel %vm380_vm5, %v379_v40, %v381_v42  ;;  %v763_v40 = vsel %vm249_vm4, %v3126_v32, -inf }
 0x2aa   :  { %v639_v46 = vpop.trf.xlu0  ;;  %v383_v47 = vadd.f32 %v382_v45, %v3126_v32 }
 0x2ab   :  { %v523_v48 = vmul.f32 0.2, %v521_v44  ;;  %v662_v49 = vrot.slane %v639_v46, %v3120_v26  ;;  %vm522_vm6 = vcmp.gt.f32.partialorder %v521_v44, 0.0 }
 0x2ac   :  { %v384_v50 = vsel %vm249_vm4, %v383_v47, -inf }
 0x2ad   :  { %v663_v51 = vadd.f32 %v662_v49, %v657_v37  ;;  %385 = vmax.xlane.f32.xlu1 %v384_v50  ;;  %v524_v52 = vsel %vm522_vm6, %v521_v44, %v523_v48  ;;  %v784_v48 = vld [vmem:[%s3415_s7] sm:$0xff]  ;;  %v785_v49 = vld [vmem:[%s3415_s7 + $0x8] sm:$0xff]  ;;  %v786_v50 = vld [vmem:[%s3415_s7 + $0x10] sm:$0xff]  ;;  %vm1596_vm6 = vcmask 195584  }
 0x2ae   :  { %v525_v53 = vadd.f32 %v524_v52, %v3126_v32  ;;  %v787_v52 = vld [vmem:[%s3415_s7 + $0x18] sm:$0xff] }
 0x2af   :  { %v665_v54 = vmul.f32 0.2, %v663_v51  ;;  %vm664_vm7 = vcmp.gt.f32.partialorder %v663_v51, 0.0 }
 0x2b0   :  { %v526_v55 = vsel %vm249_vm4, %v525_v53, -inf }
 0x2b1   :  { %527 = vmax.xlane.f32.xlu1 %v526_v55  ;;  %v666_v56 = vsel %vm664_vm7, %v663_v51, %v665_v54  ;;  %v2843_v51 = vpack.c.bf16 %v785_v49, %v784_v48  ;;  %v861_v54 = vld [vmem:[%s3416_s8] sm:$0xff]  ;;  %v862_v55 = vld [vmem:[%s3416_s8 + $0x8] sm:$0xff] }
 0x2b2   :  { %v667_v57 = vadd.f32 %v666_v56, %v3126_v32  ;;  %v863_v56 = vld [vmem:[%s3416_s8 + $0x10] sm:$0xff] }
 0x2b4   :  { %v668_v58 = vsel %vm249_vm4, %v667_v57, -inf }
 0x2b5   :  { %669 = vmax.xlane.f32.xlu0 %v668_v58  ;;  %v864_v58 = vld [vmem:[%s3416_s8 + $0x18] sm:$0xff] }
 0x2c2   :  { %396 = vrot.lane.b32.xlu1 %v3107_v12, %s2986_s1 }
 0x2ed   :  { %v252_v59 = vpop.xlane.xlu0 %251 }
 0x2ee   :  { %v253_v60 = vsub.f32 %v248_v34, %v252_v59  ;;  %v2852_v59 = vpack.c.bf16 %v864_v58, %v863_v56 }
 0x2f0   :  { %v254_v61 = vmul.f32 1.442695, %v253_v60 }
 0x2f2   :  { %2916 = vpow2.f32 %v254_v61 }
 0x2fc   :  { %v2917_v62 = vpop.eup %2916 }
 0x2fd   :  { %v256_v63 = vsel %vm249_vm4, %v2917_v62, 0.0 }
 0x2fe   :  { %257 = vadd.xlane.f32.xlu1 %v256_v63 }
 0x33a   :  { %v386_v1 = vpop.xlane.xlu1 %385 }
 0x33b   :  { %v387_v2 = vsub.f32 %v383_v47, %v386_v1 }
 0x33d   :  { %v388_v4 = vmul.f32 1.442695, %v387_v2  ;;  %v2610_v2 = vld [vmem:[%s3417_s6] ss:$0 sm:$0xff] }
 0x33e   :  { %v528_v5 = vpop.xlane.xlu1 %527 }
 0x33f   :  { %2918 = vpow2.f32 %v388_v4  ;;  %v529_v6 = vsub.f32 %v525_v53, %v528_v5  ;;  %v2846_v53 = vpack.c.bf16 %v787_v52, %v786_v50 }
 0x341   :  { %v530_v7 = vmul.f32 1.442695, %v529_v6 }
 0x342   :  { %v670_v8 = vpop.xlane.xlu0 %669  ;;  %v397_v20 = vpop.permute.xlu1 %396 }
 0x343   :  { %2920 = vpow2.f32 %v530_v7  ;;  %v671_v9 = vsub.f32 %v667_v57, %v670_v8  ;;  %v2849_v57 = vpack.c.bf16 %v862_v55, %v861_v54 }
 0x345   :  { %v672_v10 = vmul.f32 1.442695, %v671_v9 }
 0x347   :  { %2922 = vpow2.f32 %v672_v10 }
 0x349   :  { %v2919_v11 = vpop.eup %2918 }
 0x34a   :  { %v390_v13 = vsel %vm249_vm4, %v2919_v11, 0.0 }
 0x34b   :  { %391 = vadd.xlane.f32.xlu0 %v390_v13 }
 0x34d   :  { %v2921_v14 = vpop.eup %2920 }
 0x34e   :  { %v532_v16 = vsel %vm249_vm4, %v2921_v14, 0.0 }
 0x34f   :  { %533 = vadd.xlane.f32.xlu1 %v532_v16 }
 0x351   :  { %v2923_v17 = vpop.eup %2922 }
 0x352   :  { %v674_v18 = vsel %vm249_vm4, %v2923_v17, 0.0 }
 0x353   :  { %675 = vadd.xlane.f32.xlu0 %v674_v18 }
 0x360   :  { %680 = vrot.lane.b32.xlu1 %v3107_v12, %s2987_s29 }
 0x369   :  { %538 = vrot.lane.b32.xlu0 %v3107_v12, %s2988_s30 }
 0x384   :  { %764 = vmax.xlane.f32.xlu1 %v763_v40 }
 0x38b   :  { %v258_v21 = vpop.xlane.xlu1 %257 }
 0x38c   :  { %v259_v22 = vmax.f32 %v258_v21, 1e-20 }
 0x38e   :  { %2924 = vrcp.f32 %v259_v22 }
 0x398   :  { %v2925_v23 = vpop.eup %2924 }
 0x399   :  { %v261_v24 = vmul.f32 %v2925_v23, %v2917_v62 }
 0x39b   :  { %2713 = vmatmul.mubr.msk.f32.vlgmr.msra.gmra.mrb[4].mxu0 %vm249_vm4, %v261_v24 }
 0x39c   :  { %2716 = vmatpush3.msra.mxu0 %v397_v20  ;;  %2717 = vmatprep.mubr.msk.f32.mxu0 %vm2977_vm0, %v2978_v3 }
 0x39d   :  { %2725 = vmatprep.subr.mxu0 %v2978_v3 }
 0x3d8   :  { %v392_v25 = vpop.xlane.xlu0 %391 }
 0x3d9   :  { %v393_v27 = vmax.f32 %v392_v25, 1e-20 }
 0x3db   :  { %2926 = vrcp.f32 %v393_v27 }
 0x3dc   :  { %v534_v28 = vpop.xlane.xlu1 %533 }
 0x3dd   :  { %v535_v29 = vmax.f32 %v534_v28, 1e-20 }
 0x3df   :  { %2928 = vrcp.f32 %v535_v29 }
 0x3e0   :  { %v676_v12 = vpop.xlane.xlu0 %675  ;;  %v681_v35 = vpop.permute.xlu1 %680 }
 0x3e1   :  { %v677_v30 = vmax.f32 %v676_v12, 1e-20 }
 0x3e3   :  { %2930 = vrcp.f32 %v677_v30 }
 0x3e4   :  { %v539_v31 = vpop.permute.xlu0 %538 }
 0x3e5   :  { %v2927_v33 = vpop.eup %2926  ;;  %2721 = vmatpush3.msra.mxu1 %v539_v31 }
 0x3e6   :  { %v395_v34 = vmul.f32 %v2927_v33, %v2919_v11  ;;  %2842 = vmatprep.subr.bf16.mxu1 %v2976_v0 }
 0x3e8   :  { %2718 = vmatmul.mubr.msk.f32.vlgmr.msra.gmra.mrb[6].mxu0 %vm249_vm4, %v395_v34 }
 0x3e9   :  { %v2929_v36 = vpop.eup %2928  ;;  %2726 = vmatpush3.msra.mxu0 %v681_v35  ;;  %2727 = vmatprep.mubr.msk.f32.mxu0 %vm2977_vm0, %v2978_v3 }
 0x3ea   :  { %v537_v37 = vmul.f32 %v2929_v36, %v2921_v14  ;;  %2848 = vmatprep.subr.bf16.mxu0 %v2976_v0 }
 0x3ec   :  { %2723 = vmatmul.mubr.msk.f32.vlgmr.msra.gmra.mrb[0].mxu1 %vm249_vm4, %v537_v37 }
 0x3ed   :  { %v2931_v38 = vpop.eup %2930  ;;  %2738 = vmatprep.mubr.msk.f32.mxu1 %vm2977_vm0, %v2978_v3  ;;  %2844 = vmatpush3.bf16.msra.mxu1 %v2843_v51 }
 0x3ee   :  { %v679_v39 = vmul.f32 %v2931_v38, %v2923_v17  ;;  %2845 = vmatprep.subr.bf16.mxu1 %v2976_v0 }
 0x3f0   :  { %2728 = vmatmul.mubr.msk.f32.vlgmr.msra.gmra.mrb[8].mxu0 %vm249_vm4, %v679_v39 }
 0x3f1   :  { %2749 = vmatprep.mubr.msk.f32.mxu0 %vm2977_vm0, %v2978_v3  ;;  %2847 = vmatpush3.bf16.msra.mxu1 %v2846_v53 }
 0x3f2   :  { %2752 = vmatprep.subr.mxu1 %v2978_v3  ;;  %2850 = vmatpush3.bf16.msra.mxu0 %v2849_v57 }
 0x3f3   :  { %2851 = vmatprep.subr.bf16.mxu0 %v2976_v0 }
 0x3f6   :  { %2853 = vmatpush3.bf16.msra.mxu0 %v2852_v59 }
 0x3f7   :  { %2757 = vmatprep.subr.mxu0 %v2978_v3 }
 0x411   :  { %v765_v63 = vpop.xlane.xlu1 %764 }
 0x412   :  { %vm766_vm11 = vcmp.gt.f32.partialorder %v765_v63, -1.0 }
 0x413   :  { %v2609_v1 = vsel %vm766_vm11, 1.0, %v2978_v3 }
 0x46e   :  { %v331_v41 = vpop.f32.mrb[4].mxu0 }
 0x46f   :  { %335 = vst.msk [vmem:[#allocation2] sm:$0xff] %vm249_vm4, %v331_v41  ;;  %v2714_v42 = vpop.f32.mrb[5].mxu0 }
 0x4bb   :  { %v468_v43 = vpop.f32.mrb[6].mxu0 }
 0x4bc   :  { %473 = vrot.lane.b32.xlu0 %v468_v43, %s2989_s15  ;;  %v2719_v44 = vpop.f32.mrb[7].mxu0 }
 0x4bf   :  { %v610_v45 = vpop.f32.mrb[0].mxu1 }
 0x4c0   :  { %v2724_v46 = vpop.f32.mrb[1].mxu1  ;;  %615 = vrot.lane.b32.xlu0 %v610_v45, %s2990_s16 }
 0x4c3   :  { %v752_v32 = vpop.f32.mrb[8].mxu0 }
 0x4c4   :  { %757 = vrot.lane.b32.xlu0 %v752_v32, %s2991_s17  ;;  %v2729_v47 = vpop.f32.mrb[9].mxu0 }
 0x52e   :  { %v474_v60 = vpop.permute.xlu0 %473 }
 0x52f   :  { %477 = vst.msk [vmem:[#allocation2] sm:$0xff] %vm476_vm8, %v474_v60 }
 0x532   :  { %v616_v61 = vpop.permute.xlu0 %615 }
 0x533   :  { %619 = vst.msk [vmem:[#allocation2] sm:$0xff] %vm618_vm9, %v616_v61 }
 0x536   :  { %v758_v62 = vpop.permute.xlu0 %757 }
 0x537   :  { %761 = vst.msk [vmem:[#allocation2] sm:$0xff] %vm760_vm10, %v758_v62 }
 0x53e   :  { %v762_v4 = vld [vmem:[#allocation2] sm:$0xff] }
 0x53f   :  { %v769_v5 = vmul.f32 %v2609_v1, %v762_v4 }
 0x541   :  { %v777_v6 = vadd.f32 %v2610_v2, %v769_v5 }
 0x543   :  { %v779_v7 = vmul.f32 1.442695, %v777_v6  ;;  %vm778_vm12 = vcmp.gt.f32.partialorder %v777_v6, 0.0 }
 0x545   :  { %2932 = vpow2.f32 %v779_v7 }
 0x54f   :  { %v2933_v8 = vpop.eup %2932 }
 0x550   :  { %v2611_v9 = vadd.f32 -1.0, %v2933_v8 }
 0x552   :  { %v3205_v10 = vsel %vm778_vm12, %v777_v6, %v2611_v9 }
 0x553   :  { %2739 = vmatmul.mubr.msk.f32.vlgmr.msra.gmra.mrb[2].mxu1 %vm129_vm2, %v3205_v10 }
 0x554   :  { %2754 = vmatprep.mubr.msk.f32.mxu1 %vm2977_vm0, %v2978_v3 }
 0x626   :  { %v3211_v11 = vpop.f32.mrb[2].mxu1 }
 0x627   :  { %v2740_v13 = vpop.f32.mrb[3].mxu1  ;;  %2750 = vmatmul.mubr.msk.f32.vlgmr.msra.gmra.mrb[10].mxu0 %vm129_vm2, %v3211_v11  ;;  %2753 = vmatpush3.msra.mxu1 %v3211_v11 }
 0x628   :  { %2762 = vmatprep.subr.mxu1 %v2978_v3  ;;  %2759 = vmatprep.mubr.msk.f32.mxu0 %vm2977_vm0, %v2978_v3 }
 0x6fa   :  { %v934_v14 = vpop.f32.mrb[10].mxu0 }
 0x6fb   :  { %1247 = vperm.xlu1 %2909, %v934_v14   ;;  %1070 = vrot.lane.b32.xlu0 %v934_v14, %s2982_s5  ;;  %v2751_v16 = vpop.f32.mrb[11].mxu0 }
 0x6ff   :  { %1211 = vrot.lane.b32.xlu0 %v934_v14, %s2983_s26 }
 0x703   :  { %1352 = vrot.lane.b32.xlu0 %v934_v14, %s2981_s0 }
 0x707   :  { %972 = vperm.xlu0 %2907, %v934_v14  }
 0x70b   :  { %2908 = vset.pattern.permute.xlu0 %v2980_v15  ;;  %v3228_v15 = vld [vmem:[%s3418_s2] sm:$0xff] }
 0x70c   :  { %1106 = vperm.xlu0 %2908, %v934_v14  }
 0x710   :  { %2910 = vset.pattern.permute.xlu0 %v2985_v19 }
 0x711   :  { %1388 = vperm.xlu0 %2910, %v934_v14  }
 0x72f   :  { %938 = vxpose.xlu0.b32.start.end [1/1] (short) (narrow) %v934_v14, 8 }
 0x76d   :  { %v1071_v17 = vpop.permute.xlu0 %1070 }
 0x76e   :  { %1073 = vxpose.xlu1.b32.start.end [1/1] (short) (narrow) %v1071_v17, 8 }
 0x771   :  { %v1212_v18 = vpop.permute.xlu0 %1211 }
 0x772   :  { %1214 = vxpose.xlu0.b32.start.end [1/1] (short) (narrow) %v1212_v18, 8 }
 0x775   :  { %v1353_v20 = vpop.permute.xlu0 %1352 }
 0x776   :  { %1355 = vxpose.xlu0.b32.start.end [1/1] (short) (narrow) %v1353_v20, 8 }
 0x77a   :  { %v1248_v31 = vpop.permute.xlu1 %1247 }
 0x786   :  { %v973_v21 = vpop.permute.xlu0 %972 }
 0x78b   :  { %v1107_v22 = vpop.permute.xlu0 %1106 }
 0x790   :  { %v1389_v23 = vpop.permute.xlu0 %1388 }
 0x7af   :  { %v954_v24 = vpop.trf.xlu0 }
 0x7b0   :  { %v978_v25 = vrot.slane %v954_v24, %v3120_v26 }
 0x7b2   :  { %v979_v27 = vadd.f32 %v978_v25, %v973_v21 }
 0x7b4   :  { %v981_v28 = vmul.f32 0.2, %v979_v27  ;;  %vm980_vm13 = vcmp.gt.f32.partialorder %v979_v27, 0.0 }
 0x7b6   :  { %v982_v29 = vsel %vm980_vm13, %v979_v27, %v981_v28 }
 0x7b7   :  { %v983_v12 = vadd.f32 %v982_v29, %v3228_v15 }
 0x7b9   :  { %v984_v30 = vsel %vm249_vm4, %v983_v12, -inf }
 0x7ba   :  { %985 = vmax.xlane.f32.xlu0 %v984_v30 }
 0x7ee   :  { %v1089_v33 = vpop.trf.xlu1 }
 0x7ef   :  { %v1112_v34 = vrot.slane %v1089_v33, %v3120_v26 }
 0x7f1   :  { %v1113_v35 = vadd.f32 %v1112_v34, %v1107_v22 }
 0x7f2   :  { %v1230_v36 = vpop.trf.xlu0 }
 0x7f3   :  { %v1115_v37 = vmul.f32 0.2, %v1113_v35  ;;  %v1253_v38 = vrot.slane %v1230_v36, %v3120_v26  ;;  %vm1114_vm14 = vcmp.gt.f32.partialorder %v1113_v35, 0.0 }
 0x7f5   :  { %v1254_v39 = vadd.f32 %v1253_v38, %v1248_v31  ;;  %v1116_v40 = vsel %vm1114_vm14, %v1113_v35, %v1115_v37  ;;  %v1494_v35 = vsel %vm249_vm4, %v3228_v15, -inf }
 0x7f6   :  { %v1371_v41 = vpop.trf.xlu0  ;;  %v1117_v42 = vadd.f32 %v1116_v40, %v3228_v15 }
 0x7f7   :  { %v1256_v43 = vmul.f32 0.2, %v1254_v39  ;;  %v1394_v44 = vrot.slane %v1371_v41, %v3120_v26  ;;  %vm1255_vm15 = vcmp.gt.f32.partialorder %v1254_v39, 0.0 }
 0x7f8   :  { %v1118_v45 = vsel %vm249_vm4, %v1117_v42, -inf }
 0x7f9   :  { %v1395_v46 = vadd.f32 %v1394_v44, %v1389_v23  ;;  %1119 = vmax.xlane.f32.xlu1 %v1118_v45  ;;  %v1257_v32 = vsel %vm1255_vm15, %v1254_v39, %v1256_v43  ;;  %v1517_v44 = vld [vmem:[%s3419_s10 + $0x8] sm:$0xff]  ;;  %v1518_v45 = vld [vmem:[%s3419_s10 + $0x10] sm:$0xff] }
 0x7fa   :  { %v1258_v47 = vadd.f32 %v1257_v32, %v3228_v15  ;;  %v1519_v32 = vld [vmem:[%s3419_s10 + $0x18] sm:$0xff] }
 0x7fb   :  { %v1397_v48 = vmul.f32 0.2, %v1395_v46  ;;  %vm1396_vm1 = vcmp.gt.f32.partialorder %v1395_v46, 0.0 }
 0x7fc   :  { %v1259_v49 = vsel %vm249_vm4, %v1258_v47, -inf }
 0x7fd   :  { %1260 = vmax.xlane.f32.xlu1 %v1259_v49  ;;  %v1398_v50 = vsel %vm1396_vm1, %v1395_v46, %v1397_v48  ;;  %v1593_v48 = vld [vmem:[%s3420_s11] sm:$0xff]  ;;  %v1594_v49 = vld [vmem:[%s3420_s11 + $0x8] sm:$0xff] }
 0x7fe   :  { %v1399_v51 = vadd.f32 %v1398_v50, %v3228_v15  ;;  %v1516_v15 = vld [vmem:[%s3419_s10] sm:$0xff]  ;;  %v2861_v50 = vpack.c.bf16 %v1594_v49, %v1593_v48 }
 0x7ff   :  { %v2855_v46 = vpack.c.bf16 %v1517_v44, %v1516_v15 }
 0x800   :  { %v1400_v52 = vsel %vm249_vm4, %v1399_v51, -inf }
 0x801   :  { %1401 = vmax.xlane.f32.xlu0 %v1400_v52 }
 0x80e   :  { %1130 = vrot.lane.b32.xlu1 %v3211_v11, %s2986_s1 }
 0x847   :  { %v986_v53 = vpop.xlane.xlu0 %985 }
 0x848   :  { %v987_v54 = vsub.f32 %v983_v12, %v986_v53 }
 0x84a   :  { %v988_v55 = vmul.f32 1.442695, %v987_v54 }
 0x84c   :  { %2934 = vpow2.f32 %v988_v55 }
 0x856   :  { %v2935_v56 = vpop.eup %2934 }
 0x857   :  { %v990_v57 = vsel %vm249_vm4, %v2935_v56, 0.0 }
 0x858   :  { %991 = vadd.xlane.f32.xlu1 %v990_v57 }
 0x886   :  { %v1120_v58 = vpop.xlane.xlu1 %1119 }
 0x887   :  { %v1121_v59 = vsub.f32 %v1117_v42, %v1120_v58 }
 0x889   :  { %v1122_v60 = vmul.f32 1.442695, %v1121_v59  ;;  %v2619_v59 = vld [vmem:[%s3421_s9] ss:$0 sm:$0xff] }
 0x88a   :  { %v1261_v61 = vpop.xlane.xlu1 %1260 }
 0x88b   :  { %2936 = vpow2.f32 %v1122_v60  ;;  %v1262_v62 = vsub.f32 %v1258_v47, %v1261_v61  ;;  %v2858_v47 = vpack.c.bf16 %v1519_v32, %v1518_v45 }
 0x88d   :  { %v1263_v63 = vmul.f32 1.442695, %v1262_v62 }
 0x88e   :  { %v1131_v1 = vpop.permute.xlu1 %1130  ;;  %v1402_v2 = vpop.xlane.xlu0 %1401 }
 0x88f   :  { %2938 = vpow2.f32 %v1263_v63  ;;  %v1403_v4 = vsub.f32 %v1399_v51, %v1402_v2  ;;  %2758 = vmatpush3.msra.mxu0 %v1131_v1  ;;  %v1595_v51 = vld [vmem:[%s3420_s11 + $0x10] sm:$0xff] }
 0x890   :  { %2767 = vmatprep.subr.mxu0 %v2978_v3 }
 0x891   :  { %v1404_v5 = vmul.f32 1.442695, %v1403_v4  ;;  %v2485_v4 = vld [vmem:[%s3422_s12] sm:$0xff] }
 0x893   :  { %2940 = vpow2.f32 %v1404_v5 }
 0x895   :  { %v2937_v6 = vpop.eup %2936 }
 0x896   :  { %v1124_v7 = vsel %vm249_vm4, %v2937_v6, 0.0 }
 0x897   :  { %1125 = vadd.xlane.f32.xlu0 %v1124_v7  ;;  %v2488_v7 = vld [vmem:[%s3422_s12 + $0x18] sm:$0xff] }
 0x899   :  { %v2939_v8 = vpop.eup %2938 }
 0x89a   :  { %v1265_v9 = vsel %vm249_vm4, %v2939_v8, 0.0 }
 0x89b   :  { %1266 = vadd.xlane.f32.xlu1 %v1265_v9 }
 0x89d   :  { %v2941_v13 = vpop.eup %2940 }
 0x89e   :  { %v1406_v14 = vsel %vm249_vm4, %v2941_v13, 0.0 }
 0x89f   :  { %1407 = vadd.xlane.f32.xlu0 %v1406_v14 }
 0x8ac   :  { %1412 = vrot.lane.b32.xlu1 %v3211_v11, %s2987_s29 }
 0x8b5   :  { %1271 = vrot.lane.b32.xlu0 %v3211_v11, %s2988_s30 }
 0x8d0   :  { %1495 = vmax.xlane.f32.xlu1 %v1494_v35  ;;  %v3345_v35 = vld [vmem:[%s3423_s3] sm:$0xff]  ;;  %s2998_s3 = smov 116  }
 0x8e5   :  { %v992_v16 = vpop.xlane.xlu1 %991 }
 0x8e6   :  { %v993_v17 = vmax.f32 %v992_v16, 1e-20 }
 0x8e8   :  { %2942 = vrcp.f32 %v993_v17 }
 0x8f2   :  { %v2943_v18 = vpop.eup %2942 }
 0x8f3   :  { %v995_v20 = vmul.f32 %v2943_v18, %v2935_v56 }
 0x8f5   :  { %2755 = vmatmul.mubr.msk.f32.vlgmr.msra.gmra.mrb[4].mxu1 %vm249_vm4, %v995_v20  ;;  %v2993_v20 = vmov 8  }
 0x8f6   :  { %2764 = vmatprep.mubr.msk.f32.mxu1 %vm2977_vm0, %v2978_v3 }
 0x924   :  { %v1126_v21 = vpop.xlane.xlu0 %1125 }
 0x925   :  { %v1127_v22 = vmax.f32 %v1126_v21, 1e-20  ;;  %v2994_v21 = vmov 9  }
 0x927   :  { %2944 = vrcp.f32 %v1127_v22  ;;  %v2996_v22 = vmov 10  }
 0x928   :  { %v1267_v23 = vpop.xlane.xlu1 %1266 }
 0x929   :  { %v1268_v24 = vmax.f32 %v1267_v23, 1e-20 }
 0x92b   :  { %2946 = vrcp.f32 %v1268_v24 }
 0x92c   :  { %v1408_v25 = vpop.xlane.xlu0 %1407  ;;  %v1413_v12 = vpop.permute.xlu1 %1412 }
 0x92d   :  { %v1409_v27 = vmax.f32 %v1408_v25, 1e-20 }
 0x92f   :  { %2948 = vrcp.f32 %v1409_v27 }
 0x930   :  { %v1272_v11 = vpop.permute.xlu0 %1271 }
 0x931   :  { %v2945_v28 = vpop.eup %2944  ;;  %2763 = vmatpush3.msra.mxu1 %v1272_v11 }
 0x932   :  { %v1129_v29 = vmul.f32 %v2945_v28, %v2937_v6  ;;  %2854 = vmatprep.subr.bf16.mxu1 %v2976_v0  ;;  %v2487_v6 = vld [vmem:[%s3422_s12 + $0x10] sm:$0xff] }
 0x934   :  { %2760 = vmatmul.mubr.msk.f32.vlgmr.msra.gmra.mrb[12].mxu0 %vm249_vm4, %v1129_v29 }
 0x935   :  { %v2947_v30 = vpop.eup %2946  ;;  %2768 = vmatpush3.msra.mxu0 %v1413_v12  ;;  %2769 = vmatprep.mubr.msk.f32.mxu0 %vm2977_vm0, %v2978_v3 }
 0x936   :  { %v1270_v31 = vmul.f32 %v2947_v30, %v2939_v8  ;;  %2860 = vmatprep.subr.bf16.mxu0 %v2976_v0 }
 0x938   :  { %2765 = vmatmul.mubr.msk.f32.vlgmr.msra.gmra.mrb[6].mxu1 %vm249_vm4, %v1270_v31 }
 0x939   :  { %v2949_v33 = vpop.eup %2948  ;;  %2780 = vmatprep.mubr.msk.f32.mxu1 %vm2977_vm0, %v2978_v3  ;;  %2856 = vmatpush3.bf16.msra.mxu1 %v2855_v46 }
 0x93a   :  { %v1411_v34 = vmul.f32 %v2949_v33, %v2941_v13  ;;  %2857 = vmatprep.subr.bf16.mxu1 %v2976_v0  ;;  %v2867_v13 = vpack.c.bf16 %v2488_v7, %v2487_v6 }
 0x93c   :  { %2770 = vmatmul.mubr.msk.f32.vlgmr.msra.gmra.mrb[14].mxu0 %vm249_vm4, %v1411_v34 }
 0x93d   :  { %2789 = vmatprep.mubr.msk.f32.mxu0 %vm2977_vm0, %v2978_v3  ;;  %2859 = vmatpush3.bf16.msra.mxu1 %v2858_v47 }
 0x93e   :  { %2792 = vmatprep.subr.mxu1 %v2978_v3  ;;  %2862 = vmatpush3.bf16.msra.mxu0 %v2861_v50 }
 0x93f   :  { %2787 = vmatprep.subr.mxu0 %v2978_v3 }
 0x942   :  { %2788 = vmatpush3.msra.mxu0 %v1595_v51 }
 0x943   :  { %2863 = vmatprep.subr.bf16.mxu0 %v2976_v0 }
 0x95d   :  { %v1496_v55 = vpop.xlane.xlu1 %1495 }
 0x95e   :  { %vm1497_vm3 = vcmp.gt.f32.partialorder %v1496_v55, -1.0 }
 0x95f   :  { %v2618_v56 = vsel %vm1497_vm3, 1.0, %v2978_v3 }
 0x9c8   :  { %v1065_v36 = vpop.f32.mrb[4].mxu1 }
 0x9c9   :  { %1069 = vst.msk [vmem:[#allocation2] sm:$0xff] %vm249_vm4, %v1065_v36  ;;  %v2756_v37 = vpop.f32.mrb[5].mxu1 }
 0xa07   :  { %v1202_v38 = vpop.f32.mrb[12].mxu0 }
 0xa08   :  { %1207 = vrot.lane.b32.xlu0 %v1202_v38, %s2989_s15  ;;  %v2761_v39 = vpop.f32.mrb[13].mxu0 }
 0xa0b   :  { %v1343_v40 = vpop.f32.mrb[6].mxu1 }
 0xa0c   :  { %v2766_v41 = vpop.f32.mrb[7].mxu1  ;;  %1348 = vrot.lane.b32.xlu0 %v1343_v40, %s2990_s16 }
 0xa0f   :  { %v1484_v42 = vpop.f32.mrb[14].mxu0 }
 0xa10   :  { %1489 = vrot.lane.b32.xlu0 %v1484_v42, %s2991_s17  ;;  %v2771_v43 = vpop.f32.mrb[15].mxu0 }
 0xa7a   :  { %v1208_v52 = vpop.permute.xlu0 %1207 }
 0xa7b   :  { %1210 = vst.msk [vmem:[#allocation2] sm:$0xff] %vm476_vm8, %v1208_v52 }
 0xa7e   :  { %v1349_v53 = vpop.permute.xlu0 %1348 }
 0xa7f   :  { %1351 = vst.msk [vmem:[#allocation2] sm:$0xff] %vm618_vm9, %v1349_v53 }
 0xa82   :  { %v1490_v54 = vpop.permute.xlu0 %1489 }
 0xa83   :  { %1492 = vst.msk [vmem:[#allocation2] sm:$0xff] %vm760_vm10, %v1490_v54 }
 0xa8a   :  { %v1493_v57 = vld [vmem:[#allocation2] sm:$0xff] }
 0xa8b   :  { %v1500_v58 = vmul.f32 %v2618_v56, %v1493_v57 }
 0xa8d   :  { %v1501_v60 = vadd.f32 %v1500_v58, %v3205_v10  ;;  %v2486_v10 = vld [vmem:[%s3422_s12 + $0x8] sm:$0xff]  ;;  %s2995_s12 = smov 123  }
 0xa8e   :  { %v2864_v5 = vpack.c.bf16 %v2486_v10, %v2485_v4 }
 0xa8f   :  { %v1509_v61 = vadd.f32 %v2619_v59, %v1501_v60 }
 0xa91   :  { %v1511_v62 = vmul.f32 1.442695, %v1509_v61  ;;  %vm1510_vm5 = vcmp.gt.f32.partialorder %v1509_v61, 0.0 }
 0xa93   :  { %2950 = vpow2.f32 %v1511_v62 }
 0xa9d   :  { %v2951_v63 = vpop.eup %2950 }
 0xa9e   :  { %v2620_v1 = vadd.f32 -1.0, %v2951_v63 }
 0xaa0   :  { %v1514_v2 = vsel %vm1510_vm5, %v1509_v61, %v2620_v1 }
 0xaa1   :  { %2781 = vmatmul.mubr.msk.f32.vlgmr.msra.gmra.mrb[8].mxu1 %vm129_vm2, %v1514_v2 }
 0xaa2   :  { %2794 = vmatprep.mubr.msk.f32.mxu1 %vm2977_vm0, %v2978_v3 }
 0xb74   :  { %v3320_v8 = vpop.f32.mrb[8].mxu1 }
 0xb75   :  { %1788 = vrot.lane.b32.xlu1 %v3320_v8, %s2992_s23  ;;  %v2782_v9 = vpop.f32.mrb[9].mxu1  ;;  %2790 = vmatmul.mubr.msk.f32.vlgmr.msra.gmra.mrb[16].mxu0 %vm1596_vm6, %v3320_v8 }
 0xb76   :  { %2865 = vmatpush3.bf16.msra.mxu0 %v2864_v5  ;;  %2830 = vmatprep.mubr.msk.f32.mxu0 %vm2977_vm0, %v2978_v3 }
 0xb77   :  { %2866 = vmatprep.subr.bf16.mxu0 %v2976_v0 }
 0xb79   :  { %1997 = vrot.lane.b32.xlu1 %v3320_v8, %s2986_s1 }
 0xb7a   :  { %2868 = vmatpush3.bf16.msra.mxu0 %v2867_v13 }
 0xb7d   :  { %2831 = vmatmul.mubr.msk.f32.vlgmr.msra.gmra.mrb[18].mxu0 %vm129_vm2, %v1514_v2 }
 0xbe7   :  { %v1789_v14 = vpop.permute.xlu1 %1788 }
 0xbe8   :  { %2793 = vmatpush3.msra.mxu1 %v1789_v14 }
 0xbe9   :  { %2797 = vmatprep.subr.mxu1 %v2978_v3 }
 0xbeb   :  { %v3339_v23 = vpop.permute.xlu1 %1997 }
 0xc48   :  { %v1666_v16 = vpop.f32.mrb[16].mxu0 }
 0xc49   :  { %1704 = vperm.xlu1 %2909, %v1666_v16   ;;  %1670 = vxpose.xlu0.b32.start.end [1/1] (short) (narrow) %v1666_v16, 8  ;;  %v2791_v17 = vpop.f32.mrb[17].mxu0 }
 0xc4d   :  { %1728 = vrot.lane.b32.xlu1 %v1666_v16, %s2982_s5 }
 0xc4e   :  { %2911 = vset.pattern.permute.xlu1 %v2985_v19  ;;  %v2997_v19 = vmov 11  }
 0xc50   :  { %v3334_v18 = vpop.f32.mrb[18].mxu0 }
 0xc51   :  { %v2832_v0 = vpop.f32.mrb[19].mxu0  ;;  %1764 = vperm.xlu1 %2911, %v1666_v16  }
 0xc55   :  { %1937 = vrot.lane.b32.xlu1 %v1666_v16, %s2983_s26 }
 0xc59   :  { %2211 = vrot.lane.b32.xlu1 %v1666_v16, %s2992_s23 }
 0xc72   :  { %2912 = vset.pattern.permute.xlu0 %v2993_v20 }
 0xc73   :  { %1973 = vperm.xlu0 %2912, %v1666_v16  }
 0xc77   :  { %2074 = vrot.lane.b32.xlu0 %v1666_v16, %s2981_s0 }
 0xc78   :  { %2913 = vset.pattern.permute.xlu0 %v2994_v21 }
 0xc7b   :  { %2110 = vperm.xlu0 %2913, %v1666_v16  }
 0xc7f   :  { %2348 = vrot.lane.b32.xlu0 %v1666_v16, %s2995_s12 }
 0xc80   :  { %2914 = vset.pattern.permute.xlu0 %v2996_v22 }
 0xc83   :  { %2247 = vperm.xlu0 %2914, %v1666_v16  }
 0xc87   :  { %2915 = vset.pattern.permute.xlu0 %v2997_v19 }
 0xc88   :  { %2384 = vperm.xlu0 %2915, %v1666_v16  }
 0xcc8   :  { %v1705_v24 = vpop.permute.xlu1 %1704 }
 0xcc9   :  { %v1686_v29 = vpop.trf.xlu0 }
 0xcca   :  { %v1710_v12 = vrot.slane %v1686_v29, %v3120_v26 }
 0xccc   :  { %v1729_v25 = vpop.permute.xlu1 %1728  ;;  %v1711_v31 = vadd.f32 %v1710_v12, %v1705_v24 }
 0xccd   :  { %1731 = vxpose.xlu0.b32.start.end [1/1] (short) (narrow) %v1729_v25, 8 }
 0xcce   :  { %v1713_v34 = vmul.f32 0.2, %v1711_v31  ;;  %vm1712_vm2 = vcmp.gt.f32.partialorder %v1711_v31, 0.0 }
 0xcd0   :  { %v1765_v27 = vpop.permute.xlu1 %1764  ;;  %v1714_v36 = vsel %vm1712_vm2, %v1711_v31, %v1713_v34 }
 0xcd1   :  { %v1715_v37 = vadd.f32 %v1714_v36, %v3345_v35 }
 0xcd3   :  { %v1716_v38 = vsel %vm249_vm4, %v1715_v37, -inf }
 0xcd4   :  { %v1938_v11 = vpop.permute.xlu1 %1937 }
 0xcd5   :  { %1940 = vxpose.xlu1.b32.start.end [1/1] (short) (narrow) %v1938_v11, 8 }
 0xcd8   :  { %v2212_v28 = vpop.permute.xlu1 %2211 }
 0xcd9   :  { %2214 = vxpose.xlu0.b32.start.end [1/1] (short) (narrow) %v2212_v28, 8 }
 0xcf2   :  { %v1974_v30 = vpop.permute.xlu0 %1973 }
 0xcf6   :  { %v2075_v33 = vpop.permute.xlu0 %2074 }
 0xcf7   :  { %2077 = vxpose.xlu1.b32.start.end [1/1] (short) (narrow) %v2075_v33, 8 }
 0xcfa   :  { %v2111_v39 = vpop.permute.xlu0 %2110 }
 0xcfe   :  { %v2349_v40 = vpop.permute.xlu0 %2348 }
 0xd02   :  { %v2248_v41 = vpop.permute.xlu0 %2247 }
 0xd06   :  { %1717 = vmax.xlane.f32.xlu0 %v1716_v38 }
 0xd07   :  { %v2385_v42 = vpop.permute.xlu0 %2384 }
 0xd4d   :  { %v1747_v43 = vpop.trf.xlu0 }
 0xd4e   :  { %v1770_v15 = vrot.slane %v1747_v43, %v3120_v26 }
 0xd50   :  { %v1771_v44 = vadd.f32 %v1770_v15, %v1765_v27 }
 0xd52   :  { %v1773_v45 = vmul.f32 0.2, %v1771_v44  ;;  %vm1772_vm7 = vcmp.gt.f32.partialorder %v1771_v44, 0.0 }
 0xd54   :  { %v1774_v46 = vsel %vm1772_vm7, %v1771_v44, %v1773_v45 }
 0xd55   :  { %v1956_v32 = vpop.trf.xlu1  ;;  %v1775_v47 = vadd.f32 %v1774_v46, %v3345_v35 }
 0xd56   :  { %v1979_v48 = vrot.slane %v1956_v32, %v3120_v26 }
 0xd57   :  { %v1776_v49 = vsel %vm249_vm4, %v1775_v47, -inf }
 0xd58   :  { %v1980_v50 = vadd.f32 %v1979_v48, %v1974_v30  ;;  %1777 = vmax.xlane.f32.xlu1 %v1776_v49 }
 0xd59   :  { %v2230_v62 = vpop.trf.xlu0 }
 0xd5a   :  { %v1982_v51 = vmul.f32 0.2, %v1980_v50  ;;  %vm1981_vm8 = vcmp.gt.f32.partialorder %v1980_v50, 0.0  ;;  %v2253_v22 = vrot.slane %v2230_v62, %v3120_v26 }
 0xd5c   :  { %v1983_v52 = vsel %vm1981_vm8, %v1980_v50, %v1982_v51  ;;  %v2254_v27 = vadd.f32 %v2253_v22, %v2248_v41 }
 0xd5d   :  { %v1984_v53 = vadd.f32 %v1983_v52, %v3345_v35 }
 0xd5e   :  { %v2256_v29 = vmul.f32 0.2, %v2254_v27  ;;  %vm2255_vm11 = vcmp.gt.f32.partialorder %v2254_v27, 0.0 }
 0xd5f   :  { %v1985_v54 = vsel %vm249_vm4, %v1984_v53, -inf }
 0xd60   :  { %1986 = vmax.xlane.f32.xlu1 %v1985_v54  ;;  %v2257_v33 = vsel %vm2255_vm11, %v2254_v27, %v2256_v29 }
 0xd61   :  { %v2258_v38 = vadd.f32 %v2257_v33, %v3345_v35 }
 0xd77   :  { %v2093_v55 = vpop.trf.xlu1 }
 0xd78   :  { %v2116_v56 = vrot.slane %v2093_v55, %v3120_v26 }
 0xd7a   :  { %v2117_v57 = vadd.f32 %v2116_v56, %v2111_v39 }
 0xd7c   :  { %v2119_v58 = vmul.f32 0.2, %v2117_v57  ;;  %vm2118_vm9 = vcmp.gt.f32.partialorder %v2117_v57, 0.0 }
 0xd7e   :  { %v2120_v59 = vsel %vm2118_vm9, %v2117_v57, %v2119_v58 }
 0xd7f   :  { %v2121_v60 = vadd.f32 %v2120_v59, %v3345_v35 }
 0xd81   :  { %v2122_v61 = vsel %vm249_vm4, %v2121_v60, -inf }
 0xd82   :  { %2123 = vmax.xlane.f32.xlu0 %v2122_v61 }
 0xd93   :  { %2351 = vxpose.xlu1.b32.start.end [1/1] (short) (narrow) %v2349_v40, 8  ;;  %v1718_v63 = vpop.xlane.xlu0 %1717 }
 0xd94   :  { %v1719_v1 = vsub.f32 %v1715_v37, %v1718_v63  ;;  %v2629_v63 = vld [vmem:[%s3424_s13] ss:$0 sm:$0xff] }
 0xd96   :  { %v1720_v2 = vmul.f32 1.442695, %v1719_v1  ;;  %v2563_v1 = vadd.f32 %v2629_v63, %v3334_v18 }
 0xd98   :  { %2134 = vrot.lane.b32.xlu0 %v3320_v8, %s2998_s3  ;;  %2952 = vpow2.f32 %v1720_v2  ;;  %v2588_v2 = vsel %vm249_vm4, %v3345_v35, -inf }
 0xda2   :  { %v2953_v4 = vpop.eup %2952 }
 0xda3   :  { %v1722_v10 = vsel %vm249_vm4, %v2953_v4, 0.0 }
 0xdba   :  { %1723 = vadd.xlane.f32.xlu1 %v1722_v10 }
 0xde5   :  { %v1778_v5 = vpop.xlane.xlu1 %1777 }
 0xde6   :  { %v1779_v6 = vsub.f32 %v1775_v47, %v1778_v5 }
 0xde8   :  { %v1780_v7 = vmul.f32 1.442695, %v1779_v6 }
 0xdea   :  { %2954 = vpow2.f32 %v1780_v7 }
 0xded   :  { %v1987_v9 = vpop.xlane.xlu1 %1986 }
 0xdee   :  { %v1988_v13 = vsub.f32 %v1984_v53, %v1987_v9 }
 0xdf0   :  { %v1989_v14 = vmul.f32 1.442695, %v1988_v13 }
 0xdf2   :  { %2956 = vpow2.f32 %v1989_v14 }
 0xdf4   :  { %v2955_v16 = vpop.eup %2954 }
 0xdf5   :  { %v1782_v17 = vsel %vm249_vm4, %v2955_v16, 0.0 }
 0xdf6   :  { %1783 = vadd.xlane.f32.xlu0 %v1782_v17 }
 0xdfc   :  { %v2957_v0 = vpop.eup %2956 }
 0xdfd   :  { %v1991_v20 = vsel %vm249_vm4, %v2957_v0, 0.0 }
 0xdfe   :  { %1992 = vadd.xlane.f32.xlu0 %v1991_v20 }
 0xe0f   :  { %v2124_v21 = vpop.xlane.xlu0 %2123 }
 0xe10   :  { %v2125_v19 = vsub.f32 %v2121_v60, %v2124_v21 }
 0xe12   :  { %v2126_v24 = vmul.f32 1.442695, %v2125_v19 }
 0xe13   :  { %v2367_v25 = vpop.trf.xlu1  ;;  %v2135_v39 = vpop.permute.xlu0 %2134 }
 0xe14   :  { %2958 = vpow2.f32 %v2126_v24  ;;  %v2390_v11 = vrot.slane %v2367_v25, %v3120_v26  ;;  %v2259_v26 = vsel %vm249_vm4, %v2258_v38, -inf }
 0xe16   :  { %v2391_v28 = vadd.f32 %v2390_v11, %v2385_v42 }
 0xe18   :  { %v2393_v12 = vmul.f32 0.2, %v2391_v28  ;;  %vm2392_vm10 = vcmp.gt.f32.partialorder %v2391_v28, 0.0 }
 0xe1a   :  { %v2394_v30 = vsel %vm2392_vm10, %v2391_v28, %v2393_v12 }
 0xe1b   :  { %v2395_v31 = vadd.f32 %v2394_v30, %v3345_v35 }
 0xe1d   :  { %v2396_v34 = vsel %vm249_vm4, %v2395_v31, -inf }
 0xe1e   :  { %v2959_v36 = vpop.eup %2958  ;;  %2397 = vmax.xlane.f32.xlu0 %v2396_v34 }
 0xe1f   :  { %v2128_v37 = vsel %vm249_vm4, %v2959_v36, 0.0 }
 0xe20   :  { %2129 = vadd.xlane.f32.xlu1 %v2128_v37 }
 0xe24   :  { %2260 = vmax.xlane.f32.xlu1 %v2259_v26 }
 0xe47   :  { %v1724_v42 = vpop.xlane.xlu1 %1723 }
 0xe48   :  { %v1725_v43 = vmax.f32 %v1724_v42, 1e-20 }
 0xe83   :  { %v1784_v40 = vpop.xlane.xlu0 %1783 }
 0xe84   :  { %v1785_v41 = vmax.f32 %v1784_v40, 1e-20 }
 0xe86   :  { %2960 = vrcp.f32 %v1785_v41 }
 0xe87   :  { %2962 = vrcp.f32 %v1725_v43 }
 0xe8b   :  { %v1993_v15 = vpop.xlane.xlu0 %1992 }
 0xe8c   :  { %v1994_v45 = vmax.f32 %v1993_v15, 1e-20 }
 0xe8e   :  { %2964 = vrcp.f32 %v1994_v45 }
 0xe90   :  { %v2961_v44 = vpop.eup %2960 }
 0xe91   :  { %v1787_v46 = vmul.f32 %v2961_v44, %v2955_v16  ;;  %v2963_v32 = vpop.eup %2962 }
 0xe92   :  { %v1727_v47 = vmul.f32 %v2963_v32, %v2953_v4 }
 0xe93   :  { %2795 = vmatmul.mubr.msk.f32.vlgmr.msra.gmra.mrb[10].mxu1 %vm249_vm4, %v1787_v46 }
 0xe94   :  { %2798 = vmatpush3.msra.mxu1 %v3320_v8  ;;  %2799 = vmatprep.mubr.msk.f32.mxu1 %vm2977_vm0, %v2978_v3 }
 0xe95   :  { %2802 = vmatprep.subr.mxu1 %v2978_v3 }
 0xe98   :  { %v2965_v48 = vpop.eup %2964 }
 0xe99   :  { %v1996_v49 = vmul.f32 %v2965_v48, %v2957_v0 }
 0xe9b   :  { %2800 = vmatmul.mubr.msk.f32.vlgmr.msra.gmra.mrb[10].mxu1 %vm249_vm4, %v1727_v47 }
 0xe9c   :  { %2803 = vmatpush3.msra.mxu1 %v3339_v23  ;;  %2804 = vmatprep.mubr.msk.f32.mxu1 %vm2977_vm0, %v2978_v3 }
 0xe9d   :  { %2807 = vmatprep.subr.mxu1 %v2978_v3 }
 0xea3   :  { %2805 = vmatmul.mubr.msk.f32.vlgmr.msra.gmra.mrb[10].mxu1 %vm249_vm4, %v1996_v49 }
 0xea4   :  { %2808 = vmatpush3.msra.mxu1 %v2135_v39  ;;  %2809 = vmatprep.mubr.msk.f32.mxu1 %vm2977_vm0, %v2978_v3 }
 0xea5   :  { %2812 = vmatprep.subr.mxu1 %v2978_v3 }
 0xeab   :  { %v2398_v50 = vpop.xlane.xlu0 %2397 }
 0xeac   :  { %v2399_v51 = vsub.f32 %v2395_v31, %v2398_v50 }
 0xead   :  { %v2130_v52 = vpop.xlane.xlu1 %2129 }
 0xeae   :  { %v2400_v53 = vmul.f32 1.442695, %v2399_v51  ;;  %v2131_v23 = vmax.f32 %v2130_v52, 1e-20 }
 0xeb0   :  { %2966 = vpow2.f32 %v2400_v53 }
 0xeb1   :  { %2968 = vrcp.f32 %v2131_v23  ;;  %v2261_v54 = vpop.xlane.xlu1 %2260 }
 0xeb2   :  { %v2262_v55 = vsub.f32 %v2258_v38, %v2261_v54 }
 0xeb4   :  { %v2263_v56 = vmul.f32 1.442695, %v2262_v55 }
 0xeb6   :  { %2970 = vpow2.f32 %v2263_v56 }
 0xeba   :  { %v2967_v57 = vpop.eup %2966 }
 0xebb   :  { %v2969_v58 = vpop.eup %2968  ;;  %v2402_v59 = vsel %vm249_vm4, %v2967_v57, 0.0 }
 0xebc   :  { %2403 = vadd.xlane.f32.xlu1 %v2402_v59  ;;  %v2133_v60 = vmul.f32 %v2969_v58, %v2959_v36 }
 0xebe   :  { %2810 = vmatmul.mubr.msk.f32.vlgmr.msra.gmra.mrb[10].mxu1 %vm249_vm4, %v2133_v60 }
 0xebf   :  { %2814 = vmatprep.mubr.msk.f32.mxu1 %vm2977_vm0, %v2978_v3 }
 0xec0   :  { %v2971_v61 = vpop.eup %2970 }
 0xec1   :  { %v2265_v62 = vsel %vm249_vm4, %v2971_v61, 0.0 }
 0xec2   :  { %2266 = vadd.xlane.f32.xlu0 %v2265_v62 }
 0xecd   :  { %2408 = vrot.lane.b32.xlu1 %v3320_v8, %s2999_s25 }
 0xed1   :  { %2572 = vrot.lane.b32.xlu1 %v2563_v1, %s2986_s1 }
 0xed5   :  { %2580 = vrot.lane.b32.xlu1 %v2563_v1, %s2988_s30 }
 0xed8   :  { %2271 = vrot.lane.b32.xlu0 %v3320_v8, %s2988_s30 }
 0xedc   :  { %2568 = vrot.lane.b32.xlu0 %v2563_v1, %s2992_s23 }
 0xee0   :  { %2576 = vrot.lane.b32.xlu0 %v2563_v1, %s2998_s3 }
 0xee4   :  { %2584 = vrot.lane.b32.xlu0 %v2563_v1, %s2999_s25 }
 0xef9   :  { %2589 = vmax.xlane.f32.xlu1 %v2588_v2 }
 0xf49   :  { %v2404_v5 = vpop.xlane.xlu1 %2403 }
 0xf4a   :  { %v2405_v6 = vmax.f32 %v2404_v5, 1e-20 }
 0xf4d   :  { %v2409_v9 = vpop.permute.xlu1 %2408 }
 0xf4f   :  { %v2267_v4 = vpop.xlane.xlu0 %2266 }
 0xf50   :  { %v2268_v10 = vmax.f32 %v2267_v4, 1e-20 }
 0xf51   :  { %v2573_v14 = vpop.permute.xlu1 %2572 }
 0xf52   :  { %2972 = vrcp.f32 %v2268_v10 }
 0xf53   :  { %v2272_v18 = vpop.permute.xlu0 %2271  ;;  %2974 = vrcp.f32 %v2405_v6 }
 0xf54   :  { %2813 = vmatpush3.msra.mxu1 %v2272_v18 }
 0xf55   :  { %2817 = vmatprep.subr.mxu1 %v2978_v3  ;;  %v2581_v0 = vpop.permute.xlu1 %2580 }
 0xf57   :  { %v2569_v16 = vpop.permute.xlu0 %2568 }
 0xf58   :  { %v2571_v17 = vadd.f32 %v2569_v16, %v2563_v1 }
 0xf5a   :  { %v2575_v20 = vadd.f32 %v2573_v14, %v2571_v17 }
 0xf5b   :  { %v2577_v21 = vpop.permute.xlu0 %2576 }
 0xf5c   :  { %v2973_v8 = vpop.eup %2972  ;;  %v2579_v19 = vadd.f32 %v2577_v21, %v2575_v20 }
 0xf5d   :  { %v2270_v7 = vmul.f32 %v2973_v8, %v2971_v61  ;;  %v2975_v35 = vpop.eup %2974 }
 0xf5e   :  { %v2407_v13 = vmul.f32 %v2975_v35, %v2967_v57  ;;  %v2583_v24 = vadd.f32 %v2581_v0, %v2579_v19 }
 0xf5f   :  { %2815 = vmatmul.mubr.msk.f32.vlgmr.msra.gmra.mrb[10].mxu1 %vm249_vm4, %v2270_v7  ;;  %v2585_v25 = vpop.permute.xlu0 %2584 }
 0xf60   :  { %2818 = vmatpush3.msra.mxu1 %v2409_v9  ;;  %2819 = vmatprep.mubr.msk.f32.mxu1 %vm2977_vm0, %v2978_v3  ;;  %v2587_v28 = vadd.f32 %v2585_v25, %v2583_v24  ;;  %vm2597_vm0 = vcmask 31744  }
 0xf67   :  { %2820 = vmatmul.mubr.msk.f32.vlgmr.msra.gmra.mrb[10].mxu1 %vm249_vm4, %v2407_v13 }
 0xf86   :  { %v2590_v22 = vpop.xlane.xlu1 %2589 }
 0xf87   :  { %vm2591_vm12 = vcmp.gt.f32.partialorder %v2590_v22, -1.0 }
 0xf88   :  { %v2631_v27 = vsel %vm2591_vm12, 1.0, %v2978_v3 }
0x103a   :  { %v2480_v11 = vpop.f32.mrb[10].mxu1 }
0x103b   :  { %v2594_v29 = vmul.f32 %v2631_v27, %v2480_v11  ;;  %v2821_v12 = vpop.f32.mrb[11].mxu1 }
0x103d   :  { %v2595_v30 = vadd.f32 %v2594_v29, %v2587_v28 }
0x103f   :  { %v2596_v31 = vmul.f32 0.16666667, %v2595_v30 }
0x1041   :  { %2598 = vst.msk [vmem:[%s3425_s14] sm:$0xff] %vm2597_vm0, %v2596_v31 }

</bundles_post_ra>
